<compile_context>
chip_gen: v5e
topology: v5e:2x2
jax: 0.10.0
libtpu: 0.0.40
codegen_flags: <defaults>
</compile_context>

<pallas_src>
import functools
import math

import jax
import jax.numpy as jnp
from jax.experimental import pallas as pl
from jax.experimental.pallas import tpu as pltpu


def _row_tile(m, target=512):
    """Largest row tile <= target that evenly divides m (multiple of 8), else m (full block)."""
    if m <= target:
        return m
    t = (target // 8) * 8
    while t >= 8:
        if m % t == 0:
            return t
        t -= 8
    return m


def _pick_kv_tile(s, target=512):
    """Largest multiple-of-128 tile <= target that divides S, else full S (single tile)."""
    if s <= 128 or s % 128 != 0:
        return s
    t = min((target // 128) * 128, (s // 128) * 128)
    while t >= 128:
        if s % t == 0:
            return t
        t -= 128
    return s


# ---------------------------------------------------------------------------
# 1) fused QKV projection
# ---------------------------------------------------------------------------
def _qkv_proj_kernel(x_ref, wq_ref, wk_ref, wv_ref, q_ref, k_ref, v_ref):
    x = x_ref[...]
    q_ref[...] = jnp.dot(x, wq_ref[...], preferred_element_type=jnp.float32).astype(q_ref.dtype)
    k_ref[...] = jnp.dot(x, wk_ref[...], preferred_element_type=jnp.float32).astype(k_ref.dtype)
    v_ref[...] = jnp.dot(x, wv_ref[...], preferred_element_type=jnp.float32).astype(v_ref.dtype)


def _qkv_proj(x2d, wq, wk, wv):
    m, h = x2d.shape
    nq = wq.shape[1]
    nkv = wk.shape[1]
    tm = _row_tile(m)
    dt = x2d.dtype
    return pl.pallas_call(
        _qkv_proj_kernel,
        out_shape=(
            jax.ShapeDtypeStruct((m, nq), dt),
            jax.ShapeDtypeStruct((m, nkv), dt),
            jax.ShapeDtypeStruct((m, nkv), dt),
        ),
        grid_spec=pltpu.PrefetchScalarGridSpec(
            num_scalar_prefetch=0,
            grid=(m // tm,),
            in_specs=[
                pl.BlockSpec((tm, h), lambda i: (i, 0)),
                pl.BlockSpec((h, nq), lambda i: (0, 0)),
                pl.BlockSpec((h, nkv), lambda i: (0, 0)),
                pl.BlockSpec((h, nkv), lambda i: (0, 0)),
            ],
            out_specs=[
                pl.BlockSpec((tm, nq), lambda i: (i, 0)),
                pl.BlockSpec((tm, nkv), lambda i: (i, 0)),
                pl.BlockSpec((tm, nkv), lambda i: (i, 0)),
            ],
        ),
        compiler_params=pltpu.CompilerParams(
            dimension_semantics=("parallel",),
            vmem_limit_bytes=64 * 1024 * 1024),
    )(x2d, wq, wk, wv)


# ---------------------------------------------------------------------------
# 2a) per-(batch, head) attention, full S x S (also returns softmax weights)
# ---------------------------------------------------------------------------
def _attn_full_kernel(pos_ref, q_ref, k_ref, v_ref, mask_ref, o_ref, w_ref,
                      cos_s, sin_s, *, head_dim, base, scale):
    half = head_dim // 2

    # RoPE table is computed ONCE per batch element (heads is the inner grid axis) and
    # reused from VMEM scratch by all heads -> nH-fold fewer EUP transcendentals.
    @pl.when(pl.program_id(1) == 0)
    def _():
        pos = pos_ref[0].astype(jnp.float32)                         # (S, 1) sublane axis
        d = jax.lax.broadcasted_iota(jnp.float32, (1, half), 1)      # (1, half) lane axis
        inv_freq = jnp.exp(d * (-2.0 * math.log(base) / head_dim))   # base**(-2d/dim)
        freqs = pos * inv_freq                                       # VPU broadcast multiply
        cos_s[...] = jnp.cos(freqs)
        sin_s[...] = jnp.sin(freqs)

    cos = cos_s[...]
    sin = sin_s[...]
    dt = q_ref.dtype

    def rope(x_f32, extra_scale=None):
        x1 = x_f32[:, :half]
        x2 = x_f32[:, half:]
        out = jnp.concatenate([x1 * cos - x2 * sin, x2 * cos + x1 * sin], axis=-1)
        if extra_scale is not None:
            out = out * extra_scale                                  # fold 1/sqrt(D) into q
        return out.astype(dt)                                        # MXU operands in input dtype

    q_rot = rope(q_ref[0, 0].astype(jnp.float32), scale)             # (S, D)
    k_rot = rope(k_ref[0, 0].astype(jnp.float32))                    # (S, D)

    # q @ k^T on the MXU (rhs contraction on its last dim, no materialized transpose).
    s = jax.lax.dot_general(q_rot, k_rot, (((1,), (1,)), ((), ())),
                            preferred_element_type=jnp.float32)      # (S, S) f32
    s = s + mask_ref[0, 0].astype(jnp.float32)

    m = jnp.max(s, axis=-1, keepdims=True)
    e = jnp.exp(s - m)
    p = e * pl.reciprocal(jnp.sum(e, axis=-1, keepdims=True), approx=True)

    w_ref[0, 0] = p.astype(w_ref.dtype)
    out = jnp.dot(p.astype(v_ref.dtype), v_ref[0, 0],
                  preferred_element_type=jnp.float32)                # (S, D)
    o_ref[0, 0] = out.astype(o_ref.dtype)


def _attention_full(q, k, v, position_ids, mask, *, head_dim, base):
    B, nH, S, D = q.shape
    nKV = k.shape[1]
    n_rep = nH // nKV
    dt = q.dtype
    half = head_dim // 2
    pos3d = position_ids.reshape(B, S, 1)
    scale = 1.0 / math.sqrt(head_dim)

    if mask.shape[1] == 1:
        mask_map = lambda b, h: (b, 0, 0, 0)
    else:                                   # per-head mask supported too
        mask_map = lambda b, h: (b, h, 0, 0)

    kernel = functools.partial(_attn_full_kernel, head_dim=head_dim, base=base, scale=scale)
    return pl.pallas_call(
        kernel,
        out_shape=(
            jax.ShapeDtypeStruct((B, nH, S, D), dt),
            jax.ShapeDtypeStruct((B, nH, S, S), dt),
        ),
        grid_spec=pltpu.PrefetchScalarGridSpec(
            num_scalar_prefetch=0,
            grid=(B, nH),
            in_specs=[
                pl.BlockSpec((1, S, 1), lambda b, h: (b, 0, 0)),                 # position_ids
                pl.BlockSpec((1, 1, S, D), lambda b, h: (b, h, 0, 0)),           # q
                pl.BlockSpec((1, 1, S, D), lambda b, h: (b, h // n_rep, 0, 0)),  # k (GQA)
                pl.BlockSpec((1, 1, S, D), lambda b, h: (b, h // n_rep, 0, 0)),  # v (GQA)
                pl.BlockSpec((1, 1, S, S), mask_map),                            # mask
            ],
            out_specs=[
                pl.BlockSpec((1, 1, S, D), lambda b, h: (b, h, 0, 0)),
                pl.BlockSpec((1, 1, S, S), lambda b, h: (b, h, 0, 0)),
            ],
            scratch_shapes=[
                pltpu.VMEM((S, half), jnp.float32),    # cos table (per batch element)
                pltpu.VMEM((S, half), jnp.float32),    # sin table
            ],
        ),
        compiler_params=pltpu.CompilerParams(
            dimension_semantics=("parallel", "arbitrary"),   # head axis sequential: RoPE hoist
            vmem_limit_bytes=64 * 1024 * 1024),
    )(pos3d, q, k, v, mask)


# ---------------------------------------------------------------------------
# 2b) flash-style attention: KV axis tiled, online softmax, no weights output
# ---------------------------------------------------------------------------
def _attn_flash_kernel(pos_ref, q_ref, k_ref, v_ref, mask_ref, o_ref,
                       cos_s, sin_s, qrot_s, m_s, l_s, acc_s,
                       *, head_dim, base, scale, kv_tile):
    h = pl.program_id(1)
    kv = pl.program_id(2)
    half = head_dim // 2

    # RoPE table once per batch element.
    @pl.when((h == 0) & (kv == 0))
    def _():
        pos = pos_ref[0].astype(jnp.float32)                         # (S, 1)
        d = jax.lax.broadcasted_iota(jnp.float32, (1, half), 1)
        inv_freq = jnp.exp(d * (-2.0 * math.log(base) / head_dim))
        freqs = pos * inv_freq                                       # (S, half)
        cos_s[...] = jnp.cos(freqs)
        sin_s[...] = jnp.sin(freqs)

    # Per head: rotate+scale q once, init online-softmax state.
    @pl.when(kv == 0)
    def _():
        cos = cos_s[...]
        sin = sin_s[...]
        q = q_ref[0, 0].astype(jnp.float32)                          # (S, D)
        q1 = q[:, :half]
        q2 = q[:, half:]
        q_rot = jnp.concatenate([q1 * cos - q2 * sin, q2 * cos + q1 * sin], axis=-1)
        qrot_s[...] = (q_rot * scale).astype(qrot_s.dtype)           # MXU operand in input dtype
        m_s[...] = jnp.full_like(m_s, -jnp.inf)
        l_s[...] = jnp.zeros_like(l_s)
        acc_s[...] = jnp.zeros_like(acc_s)

    # Rotate the current k tile using the hoisted table rows for this tile.
    off = pl.multiple_of(kv * kv_tile, kv_tile)
    cos_t = cos_s[pl.ds(off, kv_tile), :]
    sin_t = sin_s[pl.ds(off, kv_tile), :]
    kt = k_ref[0, 0].astype(jnp.float32)                             # (kv_tile, D)
    k1 = kt[:, :half]
    k2 = kt[:, half:]
    k_rot = jnp.concatenate([k1 * cos_t - k2 * sin_t, k2 * cos_t + k1 * sin_t],
                            axis=-1).astype(qrot_s.dtype)

    s = jax.lax.dot_general(qrot_s[...], k_rot, (((1,), (1,)), ((), ())),
                            preferred_element_type=jnp.float32)      # (S, kv_tile)
    s = s + mask_ref[0, 0].astype(jnp.float32)   # NOTE: use large-negative (not -inf) masks

    m_prev = m_s[...]
    m_new = jnp.maximum(m_prev, jnp.max(s, axis=-1, keepdims=True))
    alpha = jnp.exp(m_prev - m_new)
    p = jnp.exp(s - m_new)
    l_s[...] = alpha * l_s[...] + jnp.sum(p, axis=-1, keepdims=True)
    acc_s[...] = alpha * acc_s[...] + jnp.dot(
        p.astype(v_ref.dtype), v_ref[0, 0], preferred_element_type=jnp.float32)
    m_s[...] = m_new

    @pl.when(kv == pl.num_programs(2) - 1)
    def _():
        o_ref[0, 0] = (acc_s[...] * pl.reciprocal(l_s[...], approx=True)
                       ).astype(o_ref.dtype)


def _attention_flash(q, k, v, position_ids, mask, *, head_dim, base, kv_tile=None):
    B, nH, S, D = q.shape
    nKV = k.shape[1]
    n_rep = nH // nKV
    dt = q.dtype
    half = head_dim // 2
    if kv_tile is None:
        kv_tile = _pick_kv_tile(S)
    assert S % kv_tile == 0
    n_kv = S // kv_tile
    pos3d = position_ids.reshape(B, S, 1)
    scale = 1.0 / math.sqrt(head_dim)

    if mask.shape[1] == 1:
        mask_map = lambda b, h, kv: (b, 0, 0, kv)
    else:
        mask_map = lambda b, h, kv: (b, h, 0, kv)

    kernel = functools.partial(_attn_flash_kernel, head_dim=head_dim, base=base,
                               scale=scale, kv_tile=kv_tile)
    return pl.pallas_call(
        kernel,
        out_shape=jax.ShapeDtypeStruct((B, nH, S, D), dt),
        grid_spec=pltpu.PrefetchScalarGridSpec(
            num_scalar_prefetch=0,
            grid=(B, nH, n_kv),
            in_specs=[
                pl.BlockSpec((1, S, 1), lambda b, h, kv: (b, 0, 0)),                       # pos
                pl.BlockSpec((1, 1, S, D), lambda b, h, kv: (b, h, 0, 0)),                 # q
                pl.BlockSpec((1, 1, kv_tile, D), lambda b, h, kv: (b, h // n_rep, kv, 0)), # k
                pl.BlockSpec((1, 1, kv_tile, D), lambda b, h, kv: (b, h // n_rep, kv, 0)), # v
                pl.BlockSpec((1, 1, S, kv_tile), mask_map),                                # mask
            ],
            out_specs=pl.BlockSpec((1, 1, S, D), lambda b, h, kv: (b, h, 0, 0)),
            scratch_shapes=[
                pltpu.VMEM((S, half), jnp.float32),   # cos table
                pltpu.VMEM((S, half), jnp.float32),   # sin table
                pltpu.VMEM((S, D), dt),               # q_rot * scale (MXU operand dtype)
                pltpu.VMEM((S, 1), jnp.float32),      # running max
                pltpu.VMEM((S, 1), jnp.float32),      # running denom
                pltpu.VMEM((S, D), jnp.float32),      # accumulator
            ],
        ),
        compiler_params=pltpu.CompilerParams(
            dimension_semantics=("parallel", "arbitrary", "arbitrary"),
            vmem_limit_bytes=64 * 1024 * 1024),
    )(pos3d, q, k, v, mask)


# ---------------------------------------------------------------------------
# 3) output projection
# ---------------------------------------------------------------------------
def _linear_kernel(x_ref, w_ref, o_ref):
    o_ref[...] = jnp.dot(x_ref[...], w_ref[...],
                         preferred_element_type=jnp.float32).astype(o_ref.dtype)


def _linear(x2d, w):
    m, k = x2d.shape
    n = w.shape[1]
    tm = _row_tile(m)
    return pl.pallas_call(
        _linear_kernel,
        out_shape=jax.ShapeDtypeStruct((m, n), x2d.dtype),
        grid_spec=pltpu.PrefetchScalarGridSpec(
            num_scalar_prefetch=0,
            grid=(m // tm,),
            in_specs=[
                pl.BlockSpec((tm, k), lambda i: (i, 0)),
                pl.BlockSpec((k, n), lambda i: (0, 0)),
            ],
            out_specs=pl.BlockSpec((tm, n), lambda i: (i, 0)),
        ),
        compiler_params=pltpu.CompilerParams(
            dimension_semantics=("parallel",),
            vmem_limit_bytes=64 * 1024 * 1024),
    )(x2d, w)


# ---------------------------------------------------------------------------
# full GemmaAttention forward
# ---------------------------------------------------------------------------
def gemma_attention_forward(params, hidden_states, attention_mask, position_ids,
                            *, num_heads, num_kv_heads, head_dim, rope_theta=10000.0,
                            return_attn_weights=True, kv_tile=None):
    B, S, H = hidden_states.shape
    x2d = hidden_states.reshape(B * S, H)

    q2d, k2d, v2d = _qkv_proj(x2d, params["wq"], params["wk"], params["wv"])
    q = q2d.reshape(B, S, num_heads, head_dim).transpose(0, 2, 1, 3)
    k = k2d.reshape(B, S, num_kv_heads, head_dim).transpose(0, 2, 1, 3)
    v = v2d.reshape(B, S, num_kv_heads, head_dim).transpose(0, 2, 1, 3)

    if return_attn_weights:
        attn, attn_weights = _attention_full(q, k, v, position_ids, attention_mask,
                                             head_dim=head_dim, base=rope_theta)
    else:
        attn = _attention_flash(q, k, v, position_ids, attention_mask,
                                head_dim=head_dim, base=rope_theta, kv_tile=kv_tile)
        attn_weights = None

    attn2d = attn.transpose(0, 2, 1, 3).reshape(B * S, num_heads * head_dim)
    out = _linear(attn2d, params["wo"]).reshape(B, S, H)
    return out, attn_weights


# ---------------------------------------------------------------------------
# pure-JAX reference (mirrors the PyTorch module)
# ---------------------------------------------------------------------------
def _rotate_half(x):
    h = x.shape[-1] // 2
    return jnp.concatenate([-x[..., h:], x[..., :h]], axis=-1)


def _reference_forward(params, hidden_states, attention_mask, position_ids,
                       *, num_heads, num_kv_heads, head_dim, rope_theta=10000.0):
    hp = jax.lax.Precision.HIGHEST
    B, S, H = hidden_states.shape
    n_rep = num_heads // num_kv_heads

    q = jnp.dot(hidden_states, params["wq"], precision=hp)
    k = jnp.dot(hidden_states, params["wk"], precision=hp)
    v = jnp.dot(hidden_states, params["wv"], precision=hp)
    q = q.reshape(B, S, num_heads, head_dim).transpose(0, 2, 1, 3)
    k = k.reshape(B, S, num_kv_heads, head_dim).transpose(0, 2, 1, 3)
    v = v.reshape(B, S, num_kv_heads, head_dim).transpose(0, 2, 1, 3)

    inv_freq = 1.0 / (rope_theta ** (jnp.arange(0, head_dim, 2, dtype=jnp.float32) / head_dim))
    freqs = position_ids.astype(jnp.float32)[:, :, None] * inv_freq[None, None, :]
    emb = jnp.concatenate([freqs, freqs], axis=-1)
    cos = jnp.cos(emb)[:, None, :, :]
    sin = jnp.sin(emb)[:, None, :, :]
    q = q * cos + _rotate_half(q) * sin
    k = k * cos + _rotate_half(k) * sin

    k = jnp.repeat(k, n_rep, axis=1)
    v = jnp.repeat(v, n_rep, axis=1)

    scores = jnp.einsum("bhqd,bhkd->bhqk", q, k, precision=hp) / math.sqrt(head_dim)
    scores = scores + attention_mask
    w = jax.nn.softmax(scores, axis=-1)
    out = jnp.einsum("bhqk,bhkd->bhqd", w, v, precision=hp)
    out = out.transpose(0, 2, 1, 3).reshape(B, S, num_heads * head_dim)
    out = jnp.dot(out, params["wo"], precision=hp)
    return out, w


if __name__ == "__main__":
    key = jax.random.PRNGKey(0)
    B, S = 2, 256                                    # S=256 so the flash path uses 2 KV tiles
    hidden_size = 128
    num_heads, num_kv_heads, head_dim = 4, 2, 64     # GQA with n_rep = 2
    rope_theta = 10000.0

    k1, k2, k3, k4, k5 = jax.random.split(key, 5)
    hidden_states = jax.random.normal(k1, (B, S, hidden_size), dtype=jnp.float32)
    params = {
        "wq": jax.random.normal(k2, (hidden_size, num_heads * head_dim), jnp.float32) * 0.05,
        "wk": jax.random.normal(k3, (hidden_size, num_kv_heads * head_dim), jnp.float32) * 0.05,
        "wv": jax.random.normal(k4, (hidden_size, num_kv_heads * head_dim), jnp.float32) * 0.05,
        "wo": jax.random.normal(k5, (num_heads * head_dim, hidden_size), jnp.float32) * 0.05,
    }
    position_ids = jnp.tile(jnp.arange(S, dtype=jnp.int32)[None, :], (B, 1))
    causal = jnp.where(jnp.arange(S)[None, :] <= jnp.arange(S)[:, None],
                       0.0, -1e9).astype(jnp.float32)
    attention_mask = jnp.tile(causal[None, None, :, :], (B, 1, 1, 1))

    # Path 1: module-faithful (also returns the softmax weights).
    out, attn_w = gemma_attention_forward(
        params, hidden_states, attention_mask, position_ids,
        num_heads=num_heads, num_kv_heads=num_kv_heads,
        head_dim=head_dim, rope_theta=rope_theta, return_attn_weights=True)
    out = jax.block_until_ready(out)
    attn_w = jax.block_until_ready(attn_w)

    # Path 2: flash-tiled KV axis, no quadratic weight writeback (kv_tile=128 -> 2 tiles).
    out_flash, _ = gemma_attention_forward(
        params, hidden_states, attention_mask, position_ids,
        num_heads=num_heads, num_kv_heads=num_kv_heads,
        head_dim=head_dim, rope_theta=rope_theta,
        return_attn_weights=False, kv_tile=128)
    out_flash = jax.block_until_ready(out_flash)

    ref_out, ref_w = _reference_forward(
        params, hidden_states, attention_mask, position_ids,
        num_heads=num_heads, num_kv_heads=num_kv_heads,
        head_dim=head_dim, rope_theta=rope_theta)

    assert out.shape == (B, S, hidden_size)
    assert attn_w.shape == (B, num_heads, S, S)
    assert out.dtype == hidden_states.dtype
    assert jnp.allclose(out, ref_out, atol=2e-2, rtol=2e-2), \
        float(jnp.max(jnp.abs(out - ref_out)))
    assert jnp.allclose(attn_w, ref_w, atol=2e-2, rtol=2e-2), \
        float(jnp.max(jnp.abs(attn_w - ref_w)))
    assert jnp.allclose(out_flash, ref_out, atol=2e-2, rtol=2e-2), \
        float(jnp.max(jnp.abs(out_flash - ref_out)))

    print("KERNEL_OK")
</pallas_src>

<mosaic_0001>
module attributes {stable_mosaic.version = 11 : i64} {
  func.func @_qkv_proj_kernel(%arg0: i32, %arg1: memref<512x128xf32, #tpu.memory_space<vmem>>, %arg2: memref<128x256xf32, #tpu.memory_space<vmem>>, %arg3: memref<128x128xf32, #tpu.memory_space<vmem>>, %arg4: memref<128x128xf32, #tpu.memory_space<vmem>>, %arg5: memref<512x256xf32, #tpu.memory_space<vmem>>, %arg6: memref<512x128xf32, #tpu.memory_space<vmem>>, %arg7: memref<512x128xf32, #tpu.memory_space<vmem>>) attributes {dimension_semantics = [#tpu.dimension_semantics<parallel>], iteration_bounds = array<i64: 1>, scalar_prefetch = 0 : i64, scratch_operands = 0 : i64, tpu.core_type = #tpu.core_type<tc>, window_params = [{transform_indices = @transform_0, window_bounds = array<i64: 512, 128>}, {pipeline_mode = #tpu.pipeline_mode<synchronous>, transform_indices = @transform_1, window_bounds = array<i64: 128, 256>}, {pipeline_mode = #tpu.pipeline_mode<synchronous>, transform_indices = @transform_2, window_bounds = array<i64: 128, 128>}, {pipeline_mode = #tpu.pipeline_mode<synchronous>, transform_indices = @transform_3, window_bounds = array<i64: 128, 128>}, {transform_indices = @transform_4, window_bounds = array<i64: 512, 256>}, {transform_indices = @transform_5, window_bounds = array<i64: 512, 128>}, {transform_indices = @transform_6, window_bounds = array<i64: 512, 128>}]} {
    %c0 = arith.constant 0 : index
    %c0_0 = arith.constant 0 : index
    %0 = vector.load %arg1[%c0, %c0_0] : memref<512x128xf32, #tpu.memory_space<vmem>>, vector<512x128xf32>
    %c0_1 = arith.constant 0 : index
    %c0_2 = arith.constant 0 : index
    %1 = vector.load %arg2[%c0_1, %c0_2] : memref<128x256xf32, #tpu.memory_space<vmem>>, vector<128x256xf32>
    %cst = arith.constant dense<0.000000e+00> : vector<512x256xf32>
    %2 = tpu.matmul %0, %1, %cst {dimension_numbers = #tpu.dot_dimension_numbers<[1], [0], [0], [1], [0, 0, 1, 1], [], []>} : vector<512x128xf32>, vector<128x256xf32>, vector<512x256xf32> -> vector<512x256xf32>
    %c0_3 = arith.constant 0 : index
    %c0_4 = arith.constant 0 : index
    %3 = vector.load %arg5[%c0_3, %c0_4] : memref<512x256xf32, #tpu.memory_space<vmem>>, vector<512x256xf32>
    tpu.vector_store %arg5[%c0_3, %c0_4], %2 {strides = array<i32>} : memref<512x256xf32, #tpu.memory_space<vmem>>, vector<512x256xf32>,
    %c0_5 = arith.constant 0 : index
    %c0_6 = arith.constant 0 : index
    %4 = vector.load %arg3[%c0_5, %c0_6] : memref<128x128xf32, #tpu.memory_space<vmem>>, vector<128x128xf32>
    %cst_7 = arith.constant dense<0.000000e+00> : vector<512x128xf32>
    %5 = tpu.matmul %0, %4, %cst_7 {dimension_numbers = #tpu.dot_dimension_numbers<[1], [0], [0], [1], [0, 0, 1, 1], [], []>} : vector<512x128xf32>, vector<128x128xf32>, vector<512x128xf32> -> vector<512x128xf32>
    %c0_8 = arith.constant 0 : index
    %c0_9 = arith.constant 0 : index
    %6 = vector.load %arg6[%c0_8, %c0_9] : memref<512x128xf32, #tpu.memory_space<vmem>>, vector<512x128xf32>
    tpu.vector_store %arg6[%c0_8, %c0_9], %5 {strides = array<i32>} : memref<512x128xf32, #tpu.memory_space<vmem>>, vector<512x128xf32>,
    %c0_10 = arith.constant 0 : index
    %c0_11 = arith.constant 0 : index
    %7 = vector.load %arg4[%c0_10, %c0_11] : memref<128x128xf32, #tpu.memory_space<vmem>>, vector<128x128xf32>
    %cst_12 = arith.constant dense<0.000000e+00> : vector<512x128xf32>
    %8 = tpu.matmul %0, %7, %cst_12 {dimension_numbers = #tpu.dot_dimension_numbers<[1], [0], [0], [1], [0, 0, 1, 1], [], []>} : vector<512x128xf32>, vector<128x128xf32>, vector<512x128xf32> -> vector<512x128xf32>
    %c0_13 = arith.constant 0 : index
    %c0_14 = arith.constant 0 : index
    %9 = vector.load %arg7[%c0_13, %c0_14] : memref<512x128xf32, #tpu.memory_space<vmem>>, vector<512x128xf32>
    tpu.vector_store %arg7[%c0_13, %c0_14], %8 {strides = array<i32>} : memref<512x128xf32, #tpu.memory_space<vmem>>, vector<512x128xf32>,
    return
  }
  func.func @transform_0(%arg0: i32) -> (i32, i32) {
    %c0_i32 = arith.constant 0 : i32
    %c0_i32_0 = arith.constant 0 : i32
    return %arg0, %c0_i32 : i32, i32
  }
  func.func @transform_1(%arg0: i32) -> (i32, i32) {
    %c0_i32 = arith.constant 0 : i32
    %c0_i32_0 = arith.constant 0 : i32
    %c0_i32_1 = arith.constant 0 : i32
    return %c0_i32, %c0_i32_0 : i32, i32
  }
  func.func @transform_2(%arg0: i32) -> (i32, i32) {
    %c0_i32 = arith.constant 0 : i32
    %c0_i32_0 = arith.constant 0 : i32
    %c0_i32_1 = arith.constant 0 : i32
    return %c0_i32, %c0_i32_0 : i32, i32
  }
  func.func @transform_3(%arg0: i32) -> (i32, i32) {
    %c0_i32 = arith.constant 0 : i32
    %c0_i32_0 = arith.constant 0 : i32
    %c0_i32_1 = arith.constant 0 : i32
    return %c0_i32, %c0_i32_0 : i32, i32
  }
  func.func @transform_4(%arg0: i32) -> (i32, i32) {
    %c0_i32 = arith.constant 0 : i32
    %c0_i32_0 = arith.constant 0 : i32
    return %arg0, %c0_i32 : i32, i32
  }
  func.func @transform_5(%arg0: i32) -> (i32, i32) {
    %c0_i32 = arith.constant 0 : i32
    %c0_i32_0 = arith.constant 0 : i32
    return %arg0, %c0_i32 : i32, i32
  }
  func.func @transform_6(%arg0: i32) -> (i32, i32) {
    %c0_i32 = arith.constant 0 : i32
    %c0_i32_0 = arith.constant 0 : i32
    return %arg0, %c0_i32 : i32, i32
  }
}

</mosaic_0001>

<bundles_post_ra>
// kernel: tpu_custom_call.1
= control target key start
LH: loop header
LB: loop body
LE: loop exit
PB: predicated region body
PF: predicated region fallthrough
CT: control target
= control target key end

     0   :  { %12 = vsyncpa [#allocation3], 0  ;;  %s1638_s0 = inlined_call_operand.hbm [shape: f32[512,128], index: 0, kind: input, shape index: {}]   ;;  %s1639_s1 = inlined_call_operand.hbm [shape: f32[128,256], index: 1, kind: input, shape index: {}]   ;;  %s1640_s2 = inlined_call_operand.hbm [shape: f32[128,128], index: 2, kind: input, shape index: {}]   ;;  %s1641_s3 = inlined_call_operand.hbm [shape: f32[128,128], index: 3, kind: input, shape index: {}]   ;;  %s1642_s4 = inlined_call_operand.hbm [shape: f32[512,256], index: 4, kind: output, shape index: {0}]   ;;  %s1643_s5 = inlined_call_operand.hbm [shape: f32[512,128], index: 5, kind: output, shape index: {1}]   ;;  %s1644_s6 = inlined_call_operand.hbm [shape: f32[512,128], index: 6, kind: output, shape index: {2}]  }
   0x1   :  { %13 = vsyncpa [#allocation6], 0 }
   0x2   :  { %14 = vsyncpa [#allocation9], 0 }
   0x3   :  { %15 = vsyncpa [#allocation4], 0  ;;  %s34_s23 = sshll.u32 %s1639_s1, 4  ;;  %s35_s23 = int_to_ptr.hbm [resolvable:$true] %s34_s23 }
   0x4   :  { %16 = vsyncpa [#allocation12], 0  ;;  %s1550_s24 = smov [#allocation5]   ;;  %s21_s28 = sshll.u32 %s1638_s0, 4  ;;  %s22_s28 = int_to_ptr.hbm [resolvable:$true] %s21_s28 }
   0x5   :  { %s36_s25 = sshll.u32 %s1550_s24, 4  ;;  %s1551_s29 = smov 256   ;;  %s37_s25 = int_to_ptr.vmem [resolvable:$true] %s36_s25 }
   0x6   :  { %s1552_s30 = smov 16   ;;  %s1553_s7 = smov [#allocation2]  }
   0x7   :  { %42 = dma.hbm_to_vmem [thread:$0]  %s35_s23, 4096, %s37_s25, [#allocation6], %s1551_s29, %s1551_s29, %s1552_s30  }
   0x8   :  { %s23_s8 = sshll.u32 %s1553_s7, 4  ;;  %s1554_s1 = smov 128   ;;  %s24_s8 = int_to_ptr.vmem [resolvable:$true] %s23_s8 }
   0x9   :  { %s1555_s9 = smov 8   ;;  %s47_s0 = sshll.u32 %s1640_s2, 4  ;;  %s48_s0 = int_to_ptr.hbm [resolvable:$true] %s47_s0 }
   0xa   :  { %29 = dma.hbm_to_vmem [thread:$0]  %s22_s28, 8192, %s24_s8, [#allocation3], %s1554_s1, %s1554_s1, %s1555_s9  }
   0xb   :  { %s1556_s12 = smov [#allocation7]   ;;  %s60_s16 = sshll.u32 %s1641_s3, 4  ;;  %s61_s16 = int_to_ptr.hbm [resolvable:$true] %s60_s16 }
   0xc   :  { %s49_s13 = sshll.u32 %s1556_s12, 4  ;;  %s1557_s17 = smov [#allocation8]   ;;  %s50_s13 = int_to_ptr.vmem [resolvable:$true] %s49_s13 }
   0xd   :  { %55 = dma.hbm_to_vmem [thread:$0]  %s48_s0, 2048, %s50_s13, [#allocation6], %s1554_s1, %s1554_s1, %s1555_s9  }
   0xe   :  { %s62_s18 = sshll.u32 %s1557_s17, 4  ;;  %s63_s18 = int_to_ptr.vmem [resolvable:$true] %s62_s18 }
   0xf   :  { %68 = dma.hbm_to_vmem [thread:$0]  %s61_s16, 2048, %s63_s18, [#allocation9], %s1554_s1, %s1554_s1, %s1555_s9  }
  0x10   :  { %1540 = dma.done.wait [#allocation3], 8192  }
  0x11   :  { %1541 = vsyncadd [#allocation3], 4294959104 }
  0x12   :  { %1542 = dma.done.wait [#allocation6], 6144  }
  0x13   :  { %1543 = vsyncadd [#allocation6], 4294961152 }
  0x14   :  { %1544 = dma.done.wait [#allocation9], 2048  }
  0x15   :  { %1545 = vsyncadd [#allocation9], 4294965248  ;;  %v742_v0 = vld [vmem:[#allocation7 + $0x78] sm:$0xff]  ;;  %v741_v2 = vld [vmem:[#allocation7 + $0x70] sm:$0xff]  ;;  %s1558_s2 = smov [#allocation10]   ;;  %s1311_s21 = sshll.u32 %s1642_s4, 4  ;;  %s1312_s21 = int_to_ptr.hbm [resolvable:$true] %s1311_s21 }
  0x16   :  { %v1031_v1 = vld [vmem:[#allocation8 + $0x78] sm:$0xff]  ;;  %743 = vmatpush.msra.mxu2 %v742_v0  ;;  %v1030_v3 = vld [vmem:[#allocation8 + $0x70] sm:$0xff]  ;;  %v740_v4 = vld [vmem:[#allocation7 + $0x68] sm:$0xff]  ;;  %s1309_s3 = sshll.u32 %s1558_s2, 4  ;;  %s1559_s22 = smov [#allocation11]   ;;  %s1310_s3 = int_to_ptr.vmem [resolvable:$true] %s1309_s3 }
  0x17   :  { %1032 = vmatpush.msra.mxu3 %v1031_v1  ;;  %v1029_v5 = vld [vmem:[#allocation8 + $0x68] sm:$0xff]  ;;  %v179_v6 = vld [vmem:[#allocation5 + $0xf0] sm:$0xff]  ;;  %v180_v7 = vld [vmem:[#allocation5 + $0xf8] sm:$0xff]  ;;  %s1322_s23 = sshll.u32 %s1559_s22, 4  ;;  %s1324_s26 = sshll.u32 %s1643_s5, 4  ;;  %s1323_s23 = int_to_ptr.vmem [resolvable:$true] %s1322_s23  ;;  %s1325_s26 = int_to_ptr.hbm [resolvable:$true] %s1324_s26 }
  0x18   :  { %744 = vmatpush.msra.mxu2 %v741_v2  ;;  %v177_v8 = vld [vmem:[#allocation5 + $0xe0] sm:$0xff]  ;;  %181 = vmatpush.msra.mxu0 %v179_v6  ;;  %v178_v11 = vld [vmem:[#allocation5 + $0xe8] sm:$0xff]  ;;  %v175_v12 = vld [vmem:[#allocation5 + $0xd0] sm:$0xff]  ;;  %s1560_s27 = smov [#allocation13]   ;;  %s1337_s10 = sshll.u32 %s1644_s6, 4  ;;  %s1338_s10 = int_to_ptr.hbm [resolvable:$true] %s1337_s10 }
  0x19   :  { %1033 = vmatpush.msra.mxu3 %v1030_v3  ;;  %v739_v9 = vld [vmem:[#allocation7 + $0x60] sm:$0xff]  ;;  %390 = vmatpush.msra.mxu1 %v180_v7  ;;  %v176_v13 = vld [vmem:[#allocation5 + $0xd8] sm:$0xff]  ;;  %v174_v17 = vld [vmem:[#allocation5 + $0xc8] sm:$0xff]  ;;  %s1335_s28 = sshll.u32 %s1560_s27, 4  ;;  %s1336_s28 = int_to_ptr.vmem [resolvable:$true] %s1335_s28 }
  0x1a   :  { %v1028_v10 = vld [vmem:[#allocation8 + $0x60] sm:$0xff]  ;;  %745 = vmatpush.msra.mxu2 %v740_v4  ;;  %v738_v14 = vld [vmem:[#allocation7 + $0x58] sm:$0xff]  ;;  %182 = vmatpush.msra.mxu0 %v177_v8  ;;  %v737_v18 = vld [vmem:[#allocation7 + $0x50] sm:$0xff] }
  0x1b   :  { %1034 = vmatpush.msra.mxu3 %v1029_v5  ;;  %391 = vmatpush.msra.mxu1 %v178_v11  ;;  %v1027_v15 = vld [vmem:[#allocation8 + $0x58] sm:$0xff]  ;;  %v173_v16 = vld [vmem:[#allocation5 + $0xc0] sm:$0xff]  ;;  %v1026_v19 = vld [vmem:[#allocation8 + $0x50] sm:$0xff] }
  0x1c   :  { %746 = vmatpush.msra.mxu2 %v739_v9  ;;  %183 = vmatpush.msra.mxu0 %v175_v12  ;;  %v171_v20 = vld [vmem:[#allocation5 + $0xb0] sm:$0xff]  ;;  %v172_v21 = vld [vmem:[#allocation5 + $0xb8] sm:$0xff]  ;;  %v736_v22 = vld [vmem:[#allocation7 + $0x48] sm:$0xff] }
  0x1d   :  { %1035 = vmatpush.msra.mxu3 %v1028_v10  ;;  %392 = vmatpush.msra.mxu1 %v176_v13  ;;  %v1025_v23 = vld [vmem:[#allocation8 + $0x48] sm:$0xff]  ;;  %v169_v24 = vld [vmem:[#allocation5 + $0xa0] sm:$0xff]  ;;  %v167_v28 = vld [vmem:[#allocation5 + $0x90] sm:$0xff] }
  0x1e   :  { %747 = vmatpush.msra.mxu2 %v738_v14  ;;  %184 = vmatpush.msra.mxu0 %v173_v16  ;;  %v170_v25 = vld [vmem:[#allocation5 + $0xa8] sm:$0xff]  ;;  %v735_v26 = vld [vmem:[#allocation7 + $0x40] sm:$0xff]  ;;  %v168_v29 = vld [vmem:[#allocation5 + $0x98] sm:$0xff] }
  0x1f   :  { %1036 = vmatpush.msra.mxu3 %v1027_v15  ;;  %393 = vmatpush.msra.mxu1 %v174_v17  ;;  %v1024_v27 = vld [vmem:[#allocation8 + $0x40] sm:$0xff]  ;;  %v734_v30 = vld [vmem:[#allocation7 + $0x38] sm:$0xff]  ;;  %v166_v33 = vld [vmem:[#allocation5 + $0x88] sm:$0xff] }
  0x20   :  { %748 = vmatpush.msra.mxu2 %v737_v18  ;;  %185 = vmatpush.msra.mxu0 %v171_v20  ;;  %v1023_v31 = vld [vmem:[#allocation8 + $0x38] sm:$0xff]  ;;  %v165_v32 = vld [vmem:[#allocation5 + $0x80] sm:$0xff]  ;;  %v733_v34 = vld [vmem:[#allocation7 + $0x30] sm:$0xff] }
  0x21   :  { %1037 = vmatpush.msra.mxu3 %v1026_v19  ;;  %394 = vmatpush.msra.mxu1 %v172_v21  ;;  %v1022_v35 = vld [vmem:[#allocation8 + $0x30] sm:$0xff]  ;;  %v164_v37 = vld [vmem:[#allocation5 + $0x78] sm:$0xff]  ;;  %v732_v38 = vld [vmem:[#allocation7 + $0x28] sm:$0xff] }
  0x22   :  { %749 = vmatpush.msra.mxu2 %v736_v22  ;;  %186 = vmatpush.msra.mxu0 %v169_v24  ;;  %v163_v36 = vld [vmem:[#allocation5 + $0x70] sm:$0xff]  ;;  %v1021_v39 = vld [vmem:[#allocation8 + $0x28] sm:$0xff]  ;;  %v161_v40 = vld [vmem:[#allocation5 + $0x60] sm:$0xff] }
  0x23   :  { %1038 = vmatpush.msra.mxu3 %v1025_v23  ;;  %395 = vmatpush.msra.mxu1 %v170_v25  ;;  %v162_v41 = vld [vmem:[#allocation5 + $0x68] sm:$0xff]  ;;  %v731_v42 = vld [vmem:[#allocation7 + $0x20] sm:$0xff]  ;;  %v159_v44 = vld [vmem:[#allocation5 + $0x50] sm:$0xff] }
  0x24   :  { %750 = vmatpush.msra.mxu2 %v735_v26  ;;  %187 = vmatpush.msra.mxu0 %v167_v28  ;;  %v1020_v43 = vld [vmem:[#allocation8 + $0x20] sm:$0xff]  ;;  %v160_v45 = vld [vmem:[#allocation5 + $0x58] sm:$0xff]  ;;  %v158_v49 = vld [vmem:[#allocation5 + $0x48] sm:$0xff] }
  0x25   :  { %1039 = vmatpush.msra.mxu3 %v1024_v27  ;;  %396 = vmatpush.msra.mxu1 %v168_v29  ;;  %v730_v46 = vld [vmem:[#allocation7 + $0x18] sm:$0xff]  ;;  %v157_v48 = vld [vmem:[#allocation5 + $0x40] sm:$0xff]  ;;  %v729_v50 = vld [vmem:[#allocation7 + $0x10] sm:$0xff] }
  0x26   :  { %751 = vmatpush.msra.mxu2 %v734_v30  ;;  %188 = vmatpush.msra.mxu0 %v165_v32  ;;  %v1019_v47 = vld [vmem:[#allocation8 + $0x18] sm:$0xff]  ;;  %v1018_v51 = vld [vmem:[#allocation8 + $0x10] sm:$0xff]  ;;  %v728_v54 = vld [vmem:[#allocation7 + $0x8] sm:$0xff] }
  0x27   :  { %1040 = vmatpush.msra.mxu3 %v1023_v31  ;;  %397 = vmatpush.msra.mxu1 %v166_v33  ;;  %v155_v52 = vld [vmem:[#allocation5 + $0x30] sm:$0xff]  ;;  %v156_v53 = vld [vmem:[#allocation5 + $0x38] sm:$0xff]  ;;  %v1017_v55 = vld [vmem:[#allocation8 + $0x8] sm:$0xff] }
  0x28   :  { %752 = vmatpush.msra.mxu2 %v733_v34  ;;  %189 = vmatpush.msra.mxu0 %v163_v36  ;;  %v153_v56 = vld [vmem:[#allocation5 + $0x20] sm:$0xff]  ;;  %v154_v57 = vld [vmem:[#allocation5 + $0x28] sm:$0xff]  ;;  %v151_v61 = vld [vmem:[#allocation5 + $0x10] sm:$0xff] }
  0x29   :  { %1041 = vmatpush.msra.mxu3 %v1022_v35  ;;  %398 = vmatpush.msra.mxu1 %v164_v37  ;;  %v727_v58 = vld [vmem:[#allocation7] sm:$0xff]  ;;  %v152_v62 = vld [vmem:[#allocation5 + $0x18] sm:$0xff]  ;;  %v150_v0 = vld [vmem:[#allocation5 + $0x8] sm:$0xff] }
  0x2a   :  { %753 = vmatpush.msra.mxu2 %v732_v38  ;;  %190 = vmatpush.msra.mxu0 %v161_v40  ;;  %v1016_v59 = vld [vmem:[#allocation8] sm:$0xff]  ;;  %v86_v1 = vld [vmem:[#allocation2 + $0x8] sm:$0xff]  ;;  %v87_v2 = vld [vmem:[#allocation2 + $0x10] sm:$0xff] }
  0x2b   :  { %1042 = vmatpush.msra.mxu3 %v1021_v39  ;;  %399 = vmatpush.msra.mxu1 %v162_v41  ;;  %v85_v60 = vld [vmem:[#allocation2] sm:$0xff]  ;;  %v88_v3 = vld [vmem:[#allocation2 + $0x18] sm:$0xff]  ;;  %v90_v5 = vld [vmem:[#allocation2 + $0x28] sm:$0xff] }
  0x2c   :  { %754 = vmatpush.msra.mxu2 %v731_v42  ;;  %191 = vmatpush.msra.mxu0 %v159_v44  ;;  %v149_v63 = vld [vmem:[#allocation5] sm:$0xff]  ;;  %v91_v6 = vld [vmem:[#allocation2 + $0x30] sm:$0xff]  ;;  %v92_v7 = vld [vmem:[#allocation2 + $0x38] sm:$0xff] }
  0x2d   :  { %1043 = vmatpush.msra.mxu3 %v1020_v43  ;;  %400 = vmatpush.msra.mxu1 %v160_v45  ;;  %v89_v4 = vld [vmem:[#allocation2 + $0x20] sm:$0xff]  ;;  %v94_v9 = vld [vmem:[#allocation2 + $0x48] sm:$0xff]  ;;  %v95_v10 = vld [vmem:[#allocation2 + $0x50] sm:$0xff] }
  0x2e   :  { %755 = vmatpush.msra.mxu2 %v730_v46  ;;  %192 = vmatpush.msra.mxu0 %v157_v48  ;;  %v93_v8 = vld [vmem:[#allocation2 + $0x40] sm:$0xff]  ;;  %v96_v11 = vld [vmem:[#allocation2 + $0x58] sm:$0xff]  ;;  %v98_v13 = vld [vmem:[#allocation2 + $0x68] sm:$0xff] }
  0x2f   :  { %1044 = vmatpush.msra.mxu3 %v1019_v47  ;;  %401 = vmatpush.msra.mxu1 %v158_v49  ;;  %v97_v12 = vld [vmem:[#allocation2 + $0x60] sm:$0xff]  ;;  %v99_v14 = vld [vmem:[#allocation2 + $0x70] sm:$0xff]  ;;  %v100_v15 = vld [vmem:[#allocation2 + $0x78] sm:$0xff] }
  0x30   :  { %756 = vmatpush.msra.mxu2 %v729_v50  ;;  %193 = vmatpush.msra.mxu0 %v155_v52  ;;  %v101_v16 = vld [vmem:[#allocation2 + $0x80] sm:$0xff]  ;;  %v102_v21 = vld [vmem:[#allocation2 + $0x88] sm:$0xff]  ;;  %v103_v26 = vld [vmem:[#allocation2 + $0x90] sm:$0xff] }
  0x31   :  { %1045 = vmatpush.msra.mxu3 %v1018_v51  ;;  %402 = vmatpush.msra.mxu1 %v156_v53  ;;  %v104_v31 = vld [vmem:[#allocation2 + $0x98] sm:$0xff]  ;;  %v105_v36 = vld [vmem:[#allocation2 + $0xa0] sm:$0xff]  ;;  %v106_v41 = vld [vmem:[#allocation2 + $0xa8] sm:$0xff] }
  0x32   :  { %757 = vmatpush.msra.mxu2 %v728_v54  ;;  %194 = vmatpush.msra.mxu0 %v153_v56  ;;  %v107_v46 = vld [vmem:[#allocation2 + $0xb0] sm:$0xff]  ;;  %v108_v51 = vld [vmem:[#allocation2 + $0xb8] sm:$0xff]  ;;  %v109_v56 = vld [vmem:[#allocation2 + $0xc0] sm:$0xff] }
  0x33   :  { %1046 = vmatpush.msra.mxu3 %v1017_v55  ;;  %403 = vmatpush.msra.mxu1 %v154_v57 }
  0x34   :  { %758 = vmatpush.msra.mxu2 %v727_v58  ;;  %195 = vmatpush.msra.mxu0 %v151_v61  ;;  %v110_v61 = vld [vmem:[#allocation2 + $0xc8] sm:$0xff] }
  0x35   :  { %1047 = vmatpush.msra.mxu3 %v1016_v59  ;;  %759 = vmatmul.f32.vlgmr.msra.gmra.mxu2 %v85_v60 }
  0x36   :  { %1048 = vmatmul.f32.vlgmr.msra.gmra.mxu3 %v85_v60  ;;  %404 = vmatpush.msra.mxu1 %v152_v62 }
  0x37   :  { %196 = vmatpush.msra.mxu0 %v149_v63 }
  0x38   :  { %405 = vmatpush.msra.mxu1 %v150_v0  ;;  %197 = vmatmul.f32.vlgmr.msra.gmra.mxu0 %v85_v60 }
  0x39   :  { %406 = vmatmul.f32.vlgmr.msra.gmra.mxu1 %v85_v60 }
  0x3d   :  { %762 = vmatmul.f32.gmra.mxu2 %v86_v1 }
  0x3e   :  { %1051 = vmatmul.f32.gmra.mxu3 %v86_v1 }
  0x40   :  { %200 = vmatmul.f32.gmra.mxu0 %v86_v1 }
  0x41   :  { %409 = vmatmul.f32.gmra.mxu1 %v86_v1 }
  0x45   :  { %765 = vmatmul.f32.gmra.mxu2 %v87_v2 }
  0x46   :  { %1054 = vmatmul.f32.gmra.mxu3 %v87_v2 }
  0x48   :  { %203 = vmatmul.f32.gmra.mxu0 %v87_v2 }
  0x49   :  { %412 = vmatmul.f32.gmra.mxu1 %v87_v2  ;;  %v111_v2 = vld [vmem:[#allocation2 + $0xd0] sm:$0xff] }
  0x4d   :  { %768 = vmatmul.f32.gmra.mxu2 %v88_v3 }
  0x4e   :  { %1057 = vmatmul.f32.gmra.mxu3 %v88_v3 }
  0x50   :  { %206 = vmatmul.f32.gmra.mxu0 %v88_v3 }
  0x51   :  { %415 = vmatmul.f32.gmra.mxu1 %v88_v3 }
  0x55   :  { %771 = vmatmul.f32.gmra.mxu2 %v89_v4 }
  0x56   :  { %1060 = vmatmul.f32.gmra.mxu3 %v89_v4 }
  0x58   :  { %209 = vmatmul.f32.gmra.mxu0 %v89_v4 }
  0x59   :  { %418 = vmatmul.f32.gmra.mxu1 %v89_v4 }
  0x5d   :  { %774 = vmatmul.f32.gmra.mxu2 %v90_v5 }
  0x5e   :  { %1063 = vmatmul.f32.gmra.mxu3 %v90_v5 }
  0x60   :  { %212 = vmatmul.f32.gmra.mxu0 %v90_v5 }
  0x61   :  { %421 = vmatmul.f32.gmra.mxu1 %v90_v5 }
  0x65   :  { %777 = vmatmul.f32.gmra.mxu2 %v91_v6 }
  0x66   :  { %1066 = vmatmul.f32.gmra.mxu3 %v91_v6 }
  0x68   :  { %215 = vmatmul.f32.gmra.mxu0 %v91_v6 }
  0x69   :  { %424 = vmatmul.f32.gmra.mxu1 %v91_v6 }
  0x6d   :  { %780 = vmatmul.f32.gmra.mxu2 %v92_v7 }
  0x6e   :  { %1069 = vmatmul.f32.gmra.mxu3 %v92_v7 }
  0x70   :  { %218 = vmatmul.f32.gmra.mxu0 %v92_v7 }
  0x71   :  { %427 = vmatmul.f32.gmra.mxu1 %v92_v7  ;;  %v112_v7 = vld [vmem:[#allocation2 + $0xd8] sm:$0xff] }
  0x75   :  { %783 = vmatmul.f32.gmra.mxu2 %v93_v8 }
  0x76   :  { %1072 = vmatmul.f32.gmra.mxu3 %v93_v8 }
  0x78   :  { %221 = vmatmul.f32.gmra.mxu0 %v93_v8 }
  0x79   :  { %430 = vmatmul.f32.gmra.mxu1 %v93_v8 }
  0x7d   :  { %786 = vmatmul.f32.gmra.mxu2 %v94_v9 }
  0x7e   :  { %1075 = vmatmul.f32.gmra.mxu3 %v94_v9 }
  0x80   :  { %224 = vmatmul.f32.gmra.mxu0 %v94_v9 }
  0x81   :  { %433 = vmatmul.f32.gmra.mxu1 %v94_v9 }
  0x85   :  { %789 = vmatmul.f32.gmra.mxu2 %v95_v10 }
  0x86   :  { %1078 = vmatmul.f32.gmra.mxu3 %v95_v10 }
  0x88   :  { %227 = vmatmul.f32.gmra.mxu0 %v95_v10 }
  0x89   :  { %436 = vmatmul.f32.gmra.mxu1 %v95_v10 }
  0x8d   :  { %792 = vmatmul.f32.gmra.mxu2 %v96_v11 }
  0x8e   :  { %1081 = vmatmul.f32.gmra.mxu3 %v96_v11 }
  0x90   :  { %230 = vmatmul.f32.gmra.mxu0 %v96_v11 }
  0x91   :  { %439 = vmatmul.f32.gmra.mxu1 %v96_v11 }
  0x95   :  { %795 = vmatmul.f32.gmra.mxu2 %v97_v12 }
  0x96   :  { %1084 = vmatmul.f32.gmra.mxu3 %v97_v12 }
  0x98   :  { %233 = vmatmul.f32.gmra.mxu0 %v97_v12 }
  0x99   :  { %442 = vmatmul.f32.gmra.mxu1 %v97_v12  ;;  %v113_v12 = vld [vmem:[#allocation2 + $0xe0] sm:$0xff] }
  0x9d   :  { %798 = vmatmul.f32.gmra.mxu2 %v98_v13 }
  0x9e   :  { %1087 = vmatmul.f32.gmra.mxu3 %v98_v13 }
  0xa0   :  { %236 = vmatmul.f32.gmra.mxu0 %v98_v13 }
  0xa1   :  { %445 = vmatmul.f32.gmra.mxu1 %v98_v13 }
  0xa5   :  { %801 = vmatmul.f32.gmra.mxu2 %v99_v14 }
  0xa6   :  { %1090 = vmatmul.f32.gmra.mxu3 %v99_v14 }
  0xa8   :  { %239 = vmatmul.f32.gmra.mxu0 %v99_v14 }
  0xa9   :  { %448 = vmatmul.f32.gmra.mxu1 %v99_v14 }
  0xad   :  { %804 = vmatmul.f32.gmra.mxu2 %v100_v15 }
  0xae   :  { %1093 = vmatmul.f32.gmra.mxu3 %v100_v15 }
  0xb0   :  { %242 = vmatmul.f32.gmra.mxu0 %v100_v15 }
  0xb1   :  { %451 = vmatmul.f32.gmra.mxu1 %v100_v15 }
  0xb5   :  { %807 = vmatmul.f32.gmra.mxu2 %v101_v16  ;;  %v198_v17 = vpop.f32.mrf.mxu0 }
  0xb6   :  { %1096 = vmatmul.f32.gmra.mxu3 %v101_v16  ;;  %v407_v18 = vpop.f32.mrf.mxu1  ;;  %599 = vst [vmem:[#allocation10] sm:$0xff] %v198_v17  ;;  %v114_v17 = vld [vmem:[#allocation2 + $0xe8] sm:$0xff] }
  0xb7   :  { %600 = vst [vmem:[#allocation10 + $0x8] sm:$0xff] %v407_v18 }
  0xb8   :  { %v760_v19 = vpop.f32.mrf.mxu2  ;;  %245 = vmatmul.f32.gmra.mxu0 %v101_v16 }
  0xb9   :  { %v1049_v20 = vpop.f32.mrf.mxu3  ;;  %952 = vst [vmem:[#allocation11] sm:$0xff] %v760_v19  ;;  %454 = vmatmul.f32.gmra.mxu1 %v101_v16 }
  0xba   :  { %1241 = vst [vmem:[#allocation13] sm:$0xff] %v1049_v20 }
  0xbd   :  { %810 = vmatmul.f32.gmra.mxu2 %v102_v21  ;;  %v201_v22 = vpop.f32.mrf.mxu0 }
  0xbe   :  { %1099 = vmatmul.f32.gmra.mxu3 %v102_v21  ;;  %v410_v23 = vpop.f32.mrf.mxu1  ;;  %601 = vst [vmem:[#allocation10 + $0x10] sm:$0xff] %v201_v22  ;;  %v115_v22 = vld [vmem:[#allocation2 + $0xf0] sm:$0xff] }
  0xbf   :  { %602 = vst [vmem:[#allocation10 + $0x18] sm:$0xff] %v410_v23 }
  0xc0   :  { %v763_v24 = vpop.f32.mrf.mxu2  ;;  %248 = vmatmul.f32.gmra.mxu0 %v102_v21 }
  0xc1   :  { %v1052_v25 = vpop.f32.mrf.mxu3  ;;  %953 = vst [vmem:[#allocation11 + $0x8] sm:$0xff] %v763_v24  ;;  %457 = vmatmul.f32.gmra.mxu1 %v102_v21 }
  0xc2   :  { %1242 = vst [vmem:[#allocation13 + $0x8] sm:$0xff] %v1052_v25 }
  0xc5   :  { %813 = vmatmul.f32.gmra.mxu2 %v103_v26  ;;  %v204_v27 = vpop.f32.mrf.mxu0 }
  0xc6   :  { %1102 = vmatmul.f32.gmra.mxu3 %v103_v26  ;;  %v413_v28 = vpop.f32.mrf.mxu1  ;;  %603 = vst [vmem:[#allocation10 + $0x20] sm:$0xff] %v204_v27  ;;  %v116_v27 = vld [vmem:[#allocation2 + $0xf8] sm:$0xff] }
  0xc7   :  { %604 = vst [vmem:[#allocation10 + $0x28] sm:$0xff] %v413_v28 }
  0xc8   :  { %v766_v29 = vpop.f32.mrf.mxu2  ;;  %251 = vmatmul.f32.gmra.mxu0 %v103_v26 }
  0xc9   :  { %v1055_v30 = vpop.f32.mrf.mxu3  ;;  %954 = vst [vmem:[#allocation11 + $0x10] sm:$0xff] %v766_v29  ;;  %460 = vmatmul.f32.gmra.mxu1 %v103_v26 }
  0xca   :  { %1243 = vst [vmem:[#allocation13 + $0x10] sm:$0xff] %v1055_v30 }
  0xcd   :  { %816 = vmatmul.f32.gmra.mxu2 %v104_v31  ;;  %v207_v32 = vpop.f32.mrf.mxu0 }
  0xce   :  { %1105 = vmatmul.f32.gmra.mxu3 %v104_v31  ;;  %v416_v33 = vpop.f32.mrf.mxu1  ;;  %605 = vst [vmem:[#allocation10 + $0x30] sm:$0xff] %v207_v32  ;;  %v117_v32 = vld [vmem:[#allocation2 + $0x100] sm:$0xff] }
  0xcf   :  { %606 = vst [vmem:[#allocation10 + $0x38] sm:$0xff] %v416_v33 }
  0xd0   :  { %v769_v34 = vpop.f32.mrf.mxu2  ;;  %254 = vmatmul.f32.gmra.mxu0 %v104_v31 }
  0xd1   :  { %v1058_v35 = vpop.f32.mrf.mxu3  ;;  %955 = vst [vmem:[#allocation11 + $0x18] sm:$0xff] %v769_v34  ;;  %463 = vmatmul.f32.gmra.mxu1 %v104_v31 }
  0xd2   :  { %1244 = vst [vmem:[#allocation13 + $0x18] sm:$0xff] %v1058_v35 }
  0xd5   :  { %819 = vmatmul.f32.gmra.mxu2 %v105_v36  ;;  %v210_v37 = vpop.f32.mrf.mxu0 }
  0xd6   :  { %1108 = vmatmul.f32.gmra.mxu3 %v105_v36  ;;  %v419_v38 = vpop.f32.mrf.mxu1  ;;  %607 = vst [vmem:[#allocation10 + $0x40] sm:$0xff] %v210_v37  ;;  %v118_v37 = vld [vmem:[#allocation2 + $0x108] sm:$0xff] }
  0xd7   :  { %608 = vst [vmem:[#allocation10 + $0x48] sm:$0xff] %v419_v38 }
  0xd8   :  { %v772_v39 = vpop.f32.mrf.mxu2  ;;  %257 = vmatmul.f32.gmra.mxu0 %v105_v36 }
  0xd9   :  { %v1061_v40 = vpop.f32.mrf.mxu3  ;;  %956 = vst [vmem:[#allocation11 + $0x20] sm:$0xff] %v772_v39  ;;  %466 = vmatmul.f32.gmra.mxu1 %v105_v36 }
  0xda   :  { %1245 = vst [vmem:[#allocation13 + $0x20] sm:$0xff] %v1061_v40 }
  0xdd   :  { %822 = vmatmul.f32.gmra.mxu2 %v106_v41  ;;  %v213_v42 = vpop.f32.mrf.mxu0 }
  0xde   :  { %1111 = vmatmul.f32.gmra.mxu3 %v106_v41  ;;  %v422_v43 = vpop.f32.mrf.mxu1  ;;  %609 = vst [vmem:[#allocation10 + $0x50] sm:$0xff] %v213_v42  ;;  %v119_v42 = vld [vmem:[#allocation2 + $0x110] sm:$0xff] }
  0xdf   :  { %610 = vst [vmem:[#allocation10 + $0x58] sm:$0xff] %v422_v43 }
  0xe0   :  { %v775_v44 = vpop.f32.mrf.mxu2  ;;  %260 = vmatmul.f32.gmra.mxu0 %v106_v41 }
  0xe1   :  { %v1064_v45 = vpop.f32.mrf.mxu3  ;;  %957 = vst [vmem:[#allocation11 + $0x28] sm:$0xff] %v775_v44  ;;  %469 = vmatmul.f32.gmra.mxu1 %v106_v41 }
  0xe2   :  { %1246 = vst [vmem:[#allocation13 + $0x28] sm:$0xff] %v1064_v45 }
  0xe5   :  { %825 = vmatmul.f32.gmra.mxu2 %v107_v46  ;;  %v216_v47 = vpop.f32.mrf.mxu0 }
  0xe6   :  { %1114 = vmatmul.f32.gmra.mxu3 %v107_v46  ;;  %v425_v48 = vpop.f32.mrf.mxu1  ;;  %611 = vst [vmem:[#allocation10 + $0x60] sm:$0xff] %v216_v47  ;;  %v120_v47 = vld [vmem:[#allocation2 + $0x118] sm:$0xff] }
  0xe7   :  { %612 = vst [vmem:[#allocation10 + $0x68] sm:$0xff] %v425_v48 }
  0xe8   :  { %v778_v49 = vpop.f32.mrf.mxu2  ;;  %263 = vmatmul.f32.gmra.mxu0 %v107_v46 }
  0xe9   :  { %v1067_v50 = vpop.f32.mrf.mxu3  ;;  %958 = vst [vmem:[#allocation11 + $0x30] sm:$0xff] %v778_v49  ;;  %472 = vmatmul.f32.gmra.mxu1 %v107_v46 }
  0xea   :  { %1247 = vst [vmem:[#allocation13 + $0x30] sm:$0xff] %v1067_v50 }
  0xed   :  { %828 = vmatmul.f32.gmra.mxu2 %v108_v51  ;;  %v219_v52 = vpop.f32.mrf.mxu0 }
  0xee   :  { %1117 = vmatmul.f32.gmra.mxu3 %v108_v51  ;;  %v428_v53 = vpop.f32.mrf.mxu1  ;;  %613 = vst [vmem:[#allocation10 + $0x70] sm:$0xff] %v219_v52  ;;  %v121_v52 = vld [vmem:[#allocation2 + $0x120] sm:$0xff] }
  0xef   :  { %614 = vst [vmem:[#allocation10 + $0x78] sm:$0xff] %v428_v53 }
  0xf0   :  { %v781_v54 = vpop.f32.mrf.mxu2  ;;  %266 = vmatmul.f32.gmra.mxu0 %v108_v51 }
  0xf1   :  { %v1070_v55 = vpop.f32.mrf.mxu3  ;;  %959 = vst [vmem:[#allocation11 + $0x38] sm:$0xff] %v781_v54  ;;  %475 = vmatmul.f32.gmra.mxu1 %v108_v51 }
  0xf2   :  { %1248 = vst [vmem:[#allocation13 + $0x38] sm:$0xff] %v1070_v55 }
  0xf5   :  { %831 = vmatmul.f32.gmra.mxu2 %v109_v56  ;;  %v222_v57 = vpop.f32.mrf.mxu0 }
  0xf6   :  { %1120 = vmatmul.f32.gmra.mxu3 %v109_v56  ;;  %v431_v58 = vpop.f32.mrf.mxu1  ;;  %615 = vst [vmem:[#allocation10 + $0x80] sm:$0xff] %v222_v57  ;;  %v122_v57 = vld [vmem:[#allocation2 + $0x128] sm:$0xff] }
  0xf7   :  { %616 = vst [vmem:[#allocation10 + $0x88] sm:$0xff] %v431_v58 }
  0xf8   :  { %v784_v59 = vpop.f32.mrf.mxu2  ;;  %269 = vmatmul.f32.gmra.mxu0 %v109_v56 }
  0xf9   :  { %v1073_v60 = vpop.f32.mrf.mxu3  ;;  %960 = vst [vmem:[#allocation11 + $0x40] sm:$0xff] %v784_v59  ;;  %478 = vmatmul.f32.gmra.mxu1 %v109_v56 }
  0xfa   :  { %1249 = vst [vmem:[#allocation13 + $0x40] sm:$0xff] %v1073_v60 }
  0xfd   :  { %834 = vmatmul.f32.gmra.mxu2 %v110_v61  ;;  %v225_v62 = vpop.f32.mrf.mxu0 }
  0xfe   :  { %1123 = vmatmul.f32.gmra.mxu3 %v110_v61  ;;  %v434_v63 = vpop.f32.mrf.mxu1  ;;  %617 = vst [vmem:[#allocation10 + $0x90] sm:$0xff] %v225_v62  ;;  %v123_v62 = vld [vmem:[#allocation2 + $0x130] sm:$0xff] }
  0xff   :  { %618 = vst [vmem:[#allocation10 + $0x98] sm:$0xff] %v434_v63 }
 0x100   :  { %v787_v0 = vpop.f32.mrf.mxu2  ;;  %272 = vmatmul.f32.gmra.mxu0 %v110_v61 }
 0x101   :  { %v1076_v1 = vpop.f32.mrf.mxu3  ;;  %961 = vst [vmem:[#allocation11 + $0x48] sm:$0xff] %v787_v0  ;;  %481 = vmatmul.f32.gmra.mxu1 %v110_v61 }
 0x102   :  { %1250 = vst [vmem:[#allocation13 + $0x48] sm:$0xff] %v1076_v1 }
 0x105   :  { %837 = vmatmul.f32.gmra.mxu2 %v111_v2  ;;  %v228_v3 = vpop.f32.mrf.mxu0 }
 0x106   :  { %1126 = vmatmul.f32.gmra.mxu3 %v111_v2  ;;  %v437_v4 = vpop.f32.mrf.mxu1  ;;  %619 = vst [vmem:[#allocation10 + $0xa0] sm:$0xff] %v228_v3  ;;  %v124_v3 = vld [vmem:[#allocation2 + $0x138] sm:$0xff] }
 0x107   :  { %620 = vst [vmem:[#allocation10 + $0xa8] sm:$0xff] %v437_v4 }
 0x108   :  { %v790_v5 = vpop.f32.mrf.mxu2  ;;  %275 = vmatmul.f32.gmra.mxu0 %v111_v2 }
 0x109   :  { %v1079_v6 = vpop.f32.mrf.mxu3  ;;  %962 = vst [vmem:[#allocation11 + $0x50] sm:$0xff] %v790_v5  ;;  %484 = vmatmul.f32.gmra.mxu1 %v111_v2 }
 0x10a   :  { %1251 = vst [vmem:[#allocation13 + $0x50] sm:$0xff] %v1079_v6 }
 0x10d   :  { %840 = vmatmul.f32.gmra.mxu2 %v112_v7  ;;  %v231_v8 = vpop.f32.mrf.mxu0 }
 0x10e   :  { %1129 = vmatmul.f32.gmra.mxu3 %v112_v7  ;;  %v440_v9 = vpop.f32.mrf.mxu1  ;;  %621 = vst [vmem:[#allocation10 + $0xb0] sm:$0xff] %v231_v8  ;;  %v125_v8 = vld [vmem:[#allocation2 + $0x140] sm:$0xff] }
 0x10f   :  { %622 = vst [vmem:[#allocation10 + $0xb8] sm:$0xff] %v440_v9 }
 0x110   :  { %v793_v10 = vpop.f32.mrf.mxu2  ;;  %278 = vmatmul.f32.gmra.mxu0 %v112_v7 }
 0x111   :  { %v1082_v11 = vpop.f32.mrf.mxu3  ;;  %963 = vst [vmem:[#allocation11 + $0x58] sm:$0xff] %v793_v10  ;;  %487 = vmatmul.f32.gmra.mxu1 %v112_v7 }
 0x112   :  { %1252 = vst [vmem:[#allocation13 + $0x58] sm:$0xff] %v1082_v11 }
 0x115   :  { %843 = vmatmul.f32.gmra.mxu2 %v113_v12  ;;  %v234_v13 = vpop.f32.mrf.mxu0 }
 0x116   :  { %1132 = vmatmul.f32.gmra.mxu3 %v113_v12  ;;  %v443_v14 = vpop.f32.mrf.mxu1  ;;  %623 = vst [vmem:[#allocation10 + $0xc0] sm:$0xff] %v234_v13  ;;  %v126_v13 = vld [vmem:[#allocation2 + $0x148] sm:$0xff] }
 0x117   :  { %624 = vst [vmem:[#allocation10 + $0xc8] sm:$0xff] %v443_v14 }
 0x118   :  { %v796_v15 = vpop.f32.mrf.mxu2  ;;  %281 = vmatmul.f32.gmra.mxu0 %v113_v12 }
 0x119   :  { %v1085_v16 = vpop.f32.mrf.mxu3  ;;  %964 = vst [vmem:[#allocation11 + $0x60] sm:$0xff] %v796_v15  ;;  %490 = vmatmul.f32.gmra.mxu1 %v113_v12 }
 0x11a   :  { %1253 = vst [vmem:[#allocation13 + $0x60] sm:$0xff] %v1085_v16 }
 0x11d   :  { %846 = vmatmul.f32.gmra.mxu2 %v114_v17  ;;  %v237_v18 = vpop.f32.mrf.mxu0 }
 0x11e   :  { %1135 = vmatmul.f32.gmra.mxu3 %v114_v17  ;;  %v446_v19 = vpop.f32.mrf.mxu1  ;;  %625 = vst [vmem:[#allocation10 + $0xd0] sm:$0xff] %v237_v18  ;;  %v127_v18 = vld [vmem:[#allocation2 + $0x150] sm:$0xff] }
 0x11f   :  { %626 = vst [vmem:[#allocation10 + $0xd8] sm:$0xff] %v446_v19 }
 0x120   :  { %v799_v20 = vpop.f32.mrf.mxu2  ;;  %284 = vmatmul.f32.gmra.mxu0 %v114_v17 }
 0x121   :  { %v1088_v21 = vpop.f32.mrf.mxu3  ;;  %965 = vst [vmem:[#allocation11 + $0x68] sm:$0xff] %v799_v20  ;;  %493 = vmatmul.f32.gmra.mxu1 %v114_v17 }
 0x122   :  { %1254 = vst [vmem:[#allocation13 + $0x68] sm:$0xff] %v1088_v21 }
 0x125   :  { %849 = vmatmul.f32.gmra.mxu2 %v115_v22  ;;  %v240_v23 = vpop.f32.mrf.mxu0 }
 0x126   :  { %1138 = vmatmul.f32.gmra.mxu3 %v115_v22  ;;  %v449_v24 = vpop.f32.mrf.mxu1  ;;  %627 = vst [vmem:[#allocation10 + $0xe0] sm:$0xff] %v240_v23  ;;  %v128_v23 = vld [vmem:[#allocation2 + $0x158] sm:$0xff] }
 0x127   :  { %628 = vst [vmem:[#allocation10 + $0xe8] sm:$0xff] %v449_v24 }
 0x128   :  { %v802_v25 = vpop.f32.mrf.mxu2  ;;  %287 = vmatmul.f32.gmra.mxu0 %v115_v22 }
 0x129   :  { %v1091_v26 = vpop.f32.mrf.mxu3  ;;  %966 = vst [vmem:[#allocation11 + $0x70] sm:$0xff] %v802_v25  ;;  %496 = vmatmul.f32.gmra.mxu1 %v115_v22 }
 0x12a   :  { %1255 = vst [vmem:[#allocation13 + $0x70] sm:$0xff] %v1091_v26 }
 0x12d   :  { %852 = vmatmul.f32.gmra.mxu2 %v116_v27  ;;  %v243_v28 = vpop.f32.mrf.mxu0 }
 0x12e   :  { %1141 = vmatmul.f32.gmra.mxu3 %v116_v27  ;;  %v452_v29 = vpop.f32.mrf.mxu1  ;;  %629 = vst [vmem:[#allocation10 + $0xf0] sm:$0xff] %v243_v28  ;;  %v129_v28 = vld [vmem:[#allocation2 + $0x160] sm:$0xff] }
 0x12f   :  { %630 = vst [vmem:[#allocation10 + $0xf8] sm:$0xff] %v452_v29 }
 0x130   :  { %v805_v30 = vpop.f32.mrf.mxu2  ;;  %290 = vmatmul.f32.gmra.mxu0 %v116_v27 }
 0x131   :  { %v1094_v31 = vpop.f32.mrf.mxu3  ;;  %967 = vst [vmem:[#allocation11 + $0x78] sm:$0xff] %v805_v30  ;;  %499 = vmatmul.f32.gmra.mxu1 %v116_v27 }
 0x132   :  { %1256 = vst [vmem:[#allocation13 + $0x78] sm:$0xff] %v1094_v31 }
 0x135   :  { %855 = vmatmul.f32.gmra.mxu2 %v117_v32  ;;  %v246_v33 = vpop.f32.mrf.mxu0 }
 0x136   :  { %1144 = vmatmul.f32.gmra.mxu3 %v117_v32  ;;  %v455_v34 = vpop.f32.mrf.mxu1  ;;  %631 = vst [vmem:[#allocation10 + $0x100] sm:$0xff] %v246_v33  ;;  %v130_v33 = vld [vmem:[#allocation2 + $0x168] sm:$0xff] }
 0x137   :  { %632 = vst [vmem:[#allocation10 + $0x108] sm:$0xff] %v455_v34 }
 0x138   :  { %v808_v35 = vpop.f32.mrf.mxu2  ;;  %293 = vmatmul.f32.gmra.mxu0 %v117_v32 }
 0x139   :  { %v1097_v36 = vpop.f32.mrf.mxu3  ;;  %968 = vst [vmem:[#allocation11 + $0x80] sm:$0xff] %v808_v35  ;;  %502 = vmatmul.f32.gmra.mxu1 %v117_v32 }
 0x13a   :  { %1257 = vst [vmem:[#allocation13 + $0x80] sm:$0xff] %v1097_v36 }
 0x13d   :  { %858 = vmatmul.f32.gmra.mxu2 %v118_v37  ;;  %v249_v38 = vpop.f32.mrf.mxu0 }
 0x13e   :  { %1147 = vmatmul.f32.gmra.mxu3 %v118_v37  ;;  %v458_v39 = vpop.f32.mrf.mxu1  ;;  %633 = vst [vmem:[#allocation10 + $0x110] sm:$0xff] %v249_v38  ;;  %v131_v38 = vld [vmem:[#allocation2 + $0x170] sm:$0xff] }
 0x13f   :  { %634 = vst [vmem:[#allocation10 + $0x118] sm:$0xff] %v458_v39 }
 0x140   :  { %v811_v40 = vpop.f32.mrf.mxu2  ;;  %296 = vmatmul.f32.gmra.mxu0 %v118_v37 }
 0x141   :  { %v1100_v41 = vpop.f32.mrf.mxu3  ;;  %969 = vst [vmem:[#allocation11 + $0x88] sm:$0xff] %v811_v40  ;;  %505 = vmatmul.f32.gmra.mxu1 %v118_v37 }
 0x142   :  { %1258 = vst [vmem:[#allocation13 + $0x88] sm:$0xff] %v1100_v41 }
 0x145   :  { %861 = vmatmul.f32.gmra.mxu2 %v119_v42  ;;  %v252_v43 = vpop.f32.mrf.mxu0 }
 0x146   :  { %1150 = vmatmul.f32.gmra.mxu3 %v119_v42  ;;  %v461_v44 = vpop.f32.mrf.mxu1  ;;  %635 = vst [vmem:[#allocation10 + $0x120] sm:$0xff] %v252_v43  ;;  %v132_v43 = vld [vmem:[#allocation2 + $0x178] sm:$0xff] }
 0x147   :  { %636 = vst [vmem:[#allocation10 + $0x128] sm:$0xff] %v461_v44 }
 0x148   :  { %v814_v45 = vpop.f32.mrf.mxu2  ;;  %299 = vmatmul.f32.gmra.mxu0 %v119_v42 }
 0x149   :  { %v1103_v46 = vpop.f32.mrf.mxu3  ;;  %970 = vst [vmem:[#allocation11 + $0x90] sm:$0xff] %v814_v45  ;;  %508 = vmatmul.f32.gmra.mxu1 %v119_v42 }
 0x14a   :  { %1259 = vst [vmem:[#allocation13 + $0x90] sm:$0xff] %v1103_v46 }
 0x14d   :  { %864 = vmatmul.f32.gmra.mxu2 %v120_v47  ;;  %v255_v48 = vpop.f32.mrf.mxu0 }
 0x14e   :  { %1153 = vmatmul.f32.gmra.mxu3 %v120_v47  ;;  %v464_v49 = vpop.f32.mrf.mxu1  ;;  %637 = vst [vmem:[#allocation10 + $0x130] sm:$0xff] %v255_v48  ;;  %v133_v48 = vld [vmem:[#allocation2 + $0x180] sm:$0xff] }
 0x14f   :  { %638 = vst [vmem:[#allocation10 + $0x138] sm:$0xff] %v464_v49 }
 0x150   :  { %v817_v50 = vpop.f32.mrf.mxu2  ;;  %302 = vmatmul.f32.gmra.mxu0 %v120_v47 }
 0x151   :  { %v1106_v51 = vpop.f32.mrf.mxu3  ;;  %971 = vst [vmem:[#allocation11 + $0x98] sm:$0xff] %v817_v50  ;;  %511 = vmatmul.f32.gmra.mxu1 %v120_v47 }
 0x152   :  { %1260 = vst [vmem:[#allocation13 + $0x98] sm:$0xff] %v1106_v51 }
 0x155   :  { %867 = vmatmul.f32.gmra.mxu2 %v121_v52  ;;  %v258_v53 = vpop.f32.mrf.mxu0 }
 0x156   :  { %1156 = vmatmul.f32.gmra.mxu3 %v121_v52  ;;  %v467_v54 = vpop.f32.mrf.mxu1  ;;  %639 = vst [vmem:[#allocation10 + $0x140] sm:$0xff] %v258_v53  ;;  %v134_v53 = vld [vmem:[#allocation2 + $0x188] sm:$0xff] }
 0x157   :  { %640 = vst [vmem:[#allocation10 + $0x148] sm:$0xff] %v467_v54 }
 0x158   :  { %v820_v55 = vpop.f32.mrf.mxu2  ;;  %305 = vmatmul.f32.gmra.mxu0 %v121_v52 }
 0x159   :  { %v1109_v56 = vpop.f32.mrf.mxu3  ;;  %972 = vst [vmem:[#allocation11 + $0xa0] sm:$0xff] %v820_v55  ;;  %514 = vmatmul.f32.gmra.mxu1 %v121_v52 }
 0x15a   :  { %1261 = vst [vmem:[#allocation13 + $0xa0] sm:$0xff] %v1109_v56 }
 0x15d   :  { %870 = vmatmul.f32.gmra.mxu2 %v122_v57  ;;  %v261_v58 = vpop.f32.mrf.mxu0 }
 0x15e   :  { %1159 = vmatmul.f32.gmra.mxu3 %v122_v57  ;;  %v470_v59 = vpop.f32.mrf.mxu1  ;;  %641 = vst [vmem:[#allocation10 + $0x150] sm:$0xff] %v261_v58  ;;  %v135_v58 = vld [vmem:[#allocation2 + $0x190] sm:$0xff] }
 0x15f   :  { %642 = vst [vmem:[#allocation10 + $0x158] sm:$0xff] %v470_v59 }
 0x160   :  { %v823_v60 = vpop.f32.mrf.mxu2  ;;  %308 = vmatmul.f32.gmra.mxu0 %v122_v57 }
 0x161   :  { %v1112_v61 = vpop.f32.mrf.mxu3  ;;  %973 = vst [vmem:[#allocation11 + $0xa8] sm:$0xff] %v823_v60  ;;  %517 = vmatmul.f32.gmra.mxu1 %v122_v57 }
 0x162   :  { %1262 = vst [vmem:[#allocation13 + $0xa8] sm:$0xff] %v1112_v61 }
 0x165   :  { %873 = vmatmul.f32.gmra.mxu2 %v123_v62  ;;  %v264_v63 = vpop.f32.mrf.mxu0 }
 0x166   :  { %1162 = vmatmul.f32.gmra.mxu3 %v123_v62  ;;  %v473_v0 = vpop.f32.mrf.mxu1  ;;  %643 = vst [vmem:[#allocation10 + $0x160] sm:$0xff] %v264_v63  ;;  %v136_v63 = vld [vmem:[#allocation2 + $0x198] sm:$0xff] }
 0x167   :  { %644 = vst [vmem:[#allocation10 + $0x168] sm:$0xff] %v473_v0 }
 0x168   :  { %v826_v1 = vpop.f32.mrf.mxu2  ;;  %311 = vmatmul.f32.gmra.mxu0 %v123_v62 }
 0x169   :  { %v1115_v2 = vpop.f32.mrf.mxu3  ;;  %974 = vst [vmem:[#allocation11 + $0xb0] sm:$0xff] %v826_v1  ;;  %520 = vmatmul.f32.gmra.mxu1 %v123_v62 }
 0x16a   :  { %1263 = vst [vmem:[#allocation13 + $0xb0] sm:$0xff] %v1115_v2 }
 0x16d   :  { %876 = vmatmul.f32.gmra.mxu2 %v124_v3  ;;  %v267_v4 = vpop.f32.mrf.mxu0 }
 0x16e   :  { %1165 = vmatmul.f32.gmra.mxu3 %v124_v3  ;;  %v476_v5 = vpop.f32.mrf.mxu1  ;;  %645 = vst [vmem:[#allocation10 + $0x170] sm:$0xff] %v267_v4  ;;  %v137_v4 = vld [vmem:[#allocation2 + $0x1a0] sm:$0xff] }
 0x16f   :  { %646 = vst [vmem:[#allocation10 + $0x178] sm:$0xff] %v476_v5 }
 0x170   :  { %v829_v6 = vpop.f32.mrf.mxu2  ;;  %314 = vmatmul.f32.gmra.mxu0 %v124_v3 }
 0x171   :  { %v1118_v7 = vpop.f32.mrf.mxu3  ;;  %975 = vst [vmem:[#allocation11 + $0xb8] sm:$0xff] %v829_v6  ;;  %523 = vmatmul.f32.gmra.mxu1 %v124_v3 }
 0x172   :  { %1264 = vst [vmem:[#allocation13 + $0xb8] sm:$0xff] %v1118_v7 }
 0x175   :  { %879 = vmatmul.f32.gmra.mxu2 %v125_v8  ;;  %v270_v9 = vpop.f32.mrf.mxu0 }
 0x176   :  { %1168 = vmatmul.f32.gmra.mxu3 %v125_v8  ;;  %v479_v10 = vpop.f32.mrf.mxu1  ;;  %647 = vst [vmem:[#allocation10 + $0x180] sm:$0xff] %v270_v9  ;;  %v138_v9 = vld [vmem:[#allocation2 + $0x1a8] sm:$0xff] }
 0x177   :  { %648 = vst [vmem:[#allocation10 + $0x188] sm:$0xff] %v479_v10 }
 0x178   :  { %v832_v11 = vpop.f32.mrf.mxu2  ;;  %317 = vmatmul.f32.gmra.mxu0 %v125_v8 }
 0x179   :  { %v1121_v12 = vpop.f32.mrf.mxu3  ;;  %976 = vst [vmem:[#allocation11 + $0xc0] sm:$0xff] %v832_v11  ;;  %526 = vmatmul.f32.gmra.mxu1 %v125_v8 }
 0x17a   :  { %1265 = vst [vmem:[#allocation13 + $0xc0] sm:$0xff] %v1121_v12 }
 0x17d   :  { %882 = vmatmul.f32.gmra.mxu2 %v126_v13  ;;  %v273_v14 = vpop.f32.mrf.mxu0 }
 0x17e   :  { %1171 = vmatmul.f32.gmra.mxu3 %v126_v13  ;;  %v482_v15 = vpop.f32.mrf.mxu1  ;;  %649 = vst [vmem:[#allocation10 + $0x190] sm:$0xff] %v273_v14  ;;  %v139_v14 = vld [vmem:[#allocation2 + $0x1b0] sm:$0xff] }
 0x17f   :  { %650 = vst [vmem:[#allocation10 + $0x198] sm:$0xff] %v482_v15 }
 0x180   :  { %v835_v16 = vpop.f32.mrf.mxu2  ;;  %320 = vmatmul.f32.gmra.mxu0 %v126_v13 }
 0x181   :  { %v1124_v17 = vpop.f32.mrf.mxu3  ;;  %977 = vst [vmem:[#allocation11 + $0xc8] sm:$0xff] %v835_v16  ;;  %529 = vmatmul.f32.gmra.mxu1 %v126_v13 }
 0x182   :  { %1266 = vst [vmem:[#allocation13 + $0xc8] sm:$0xff] %v1124_v17 }
 0x185   :  { %885 = vmatmul.f32.gmra.mxu2 %v127_v18  ;;  %v276_v19 = vpop.f32.mrf.mxu0 }
 0x186   :  { %1174 = vmatmul.f32.gmra.mxu3 %v127_v18  ;;  %v485_v20 = vpop.f32.mrf.mxu1  ;;  %651 = vst [vmem:[#allocation10 + $0x1a0] sm:$0xff] %v276_v19  ;;  %v140_v19 = vld [vmem:[#allocation2 + $0x1b8] sm:$0xff] }
 0x187   :  { %652 = vst [vmem:[#allocation10 + $0x1a8] sm:$0xff] %v485_v20 }
 0x188   :  { %v838_v21 = vpop.f32.mrf.mxu2  ;;  %323 = vmatmul.f32.gmra.mxu0 %v127_v18 }
 0x189   :  { %v1127_v22 = vpop.f32.mrf.mxu3  ;;  %978 = vst [vmem:[#allocation11 + $0xd0] sm:$0xff] %v838_v21  ;;  %532 = vmatmul.f32.gmra.mxu1 %v127_v18 }
 0x18a   :  { %1267 = vst [vmem:[#allocation13 + $0xd0] sm:$0xff] %v1127_v22 }
 0x18d   :  { %888 = vmatmul.f32.gmra.mxu2 %v128_v23  ;;  %v279_v24 = vpop.f32.mrf.mxu0 }
 0x18e   :  { %1177 = vmatmul.f32.gmra.mxu3 %v128_v23  ;;  %v488_v25 = vpop.f32.mrf.mxu1  ;;  %653 = vst [vmem:[#allocation10 + $0x1b0] sm:$0xff] %v279_v24  ;;  %v141_v24 = vld [vmem:[#allocation2 + $0x1c0] sm:$0xff] }
 0x18f   :  { %654 = vst [vmem:[#allocation10 + $0x1b8] sm:$0xff] %v488_v25 }
 0x190   :  { %v841_v26 = vpop.f32.mrf.mxu2  ;;  %326 = vmatmul.f32.gmra.mxu0 %v128_v23 }
 0x191   :  { %v1130_v27 = vpop.f32.mrf.mxu3  ;;  %979 = vst [vmem:[#allocation11 + $0xd8] sm:$0xff] %v841_v26  ;;  %535 = vmatmul.f32.gmra.mxu1 %v128_v23 }
 0x192   :  { %1268 = vst [vmem:[#allocation13 + $0xd8] sm:$0xff] %v1130_v27 }
 0x195   :  { %891 = vmatmul.f32.gmra.mxu2 %v129_v28  ;;  %v282_v29 = vpop.f32.mrf.mxu0 }
 0x196   :  { %1180 = vmatmul.f32.gmra.mxu3 %v129_v28  ;;  %v491_v30 = vpop.f32.mrf.mxu1  ;;  %655 = vst [vmem:[#allocation10 + $0x1c0] sm:$0xff] %v282_v29  ;;  %v142_v29 = vld [vmem:[#allocation2 + $0x1c8] sm:$0xff] }
 0x197   :  { %656 = vst [vmem:[#allocation10 + $0x1c8] sm:$0xff] %v491_v30 }
 0x198   :  { %v844_v31 = vpop.f32.mrf.mxu2  ;;  %329 = vmatmul.f32.gmra.mxu0 %v129_v28 }
 0x199   :  { %v1133_v32 = vpop.f32.mrf.mxu3  ;;  %980 = vst [vmem:[#allocation11 + $0xe0] sm:$0xff] %v844_v31  ;;  %538 = vmatmul.f32.gmra.mxu1 %v129_v28 }
 0x19a   :  { %1269 = vst [vmem:[#allocation13 + $0xe0] sm:$0xff] %v1133_v32 }
 0x19d   :  { %894 = vmatmul.f32.gmra.mxu2 %v130_v33  ;;  %v285_v34 = vpop.f32.mrf.mxu0 }
 0x19e   :  { %1183 = vmatmul.f32.gmra.mxu3 %v130_v33  ;;  %v494_v35 = vpop.f32.mrf.mxu1  ;;  %657 = vst [vmem:[#allocation10 + $0x1d0] sm:$0xff] %v285_v34  ;;  %v143_v34 = vld [vmem:[#allocation2 + $0x1d0] sm:$0xff] }
 0x19f   :  { %658 = vst [vmem:[#allocation10 + $0x1d8] sm:$0xff] %v494_v35 }
 0x1a0   :  { %v847_v36 = vpop.f32.mrf.mxu2  ;;  %332 = vmatmul.f32.gmra.mxu0 %v130_v33 }
 0x1a1   :  { %v1136_v37 = vpop.f32.mrf.mxu3  ;;  %981 = vst [vmem:[#allocation11 + $0xe8] sm:$0xff] %v847_v36  ;;  %541 = vmatmul.f32.gmra.mxu1 %v130_v33 }
 0x1a2   :  { %1270 = vst [vmem:[#allocation13 + $0xe8] sm:$0xff] %v1136_v37 }
 0x1a5   :  { %897 = vmatmul.f32.gmra.mxu2 %v131_v38  ;;  %v288_v39 = vpop.f32.mrf.mxu0 }
 0x1a6   :  { %1186 = vmatmul.f32.gmra.mxu3 %v131_v38  ;;  %v497_v40 = vpop.f32.mrf.mxu1  ;;  %659 = vst [vmem:[#allocation10 + $0x1e0] sm:$0xff] %v288_v39  ;;  %v144_v39 = vld [vmem:[#allocation2 + $0x1d8] sm:$0xff] }
 0x1a7   :  { %660 = vst [vmem:[#allocation10 + $0x1e8] sm:$0xff] %v497_v40 }
 0x1a8   :  { %v850_v41 = vpop.f32.mrf.mxu2  ;;  %335 = vmatmul.f32.gmra.mxu0 %v131_v38 }
 0x1a9   :  { %v1139_v42 = vpop.f32.mrf.mxu3  ;;  %982 = vst [vmem:[#allocation11 + $0xf0] sm:$0xff] %v850_v41  ;;  %544 = vmatmul.f32.gmra.mxu1 %v131_v38 }
 0x1aa   :  { %1271 = vst [vmem:[#allocation13 + $0xf0] sm:$0xff] %v1139_v42 }
 0x1ad   :  { %900 = vmatmul.f32.gmra.mxu2 %v132_v43  ;;  %v291_v44 = vpop.f32.mrf.mxu0 }
 0x1ae   :  { %1189 = vmatmul.f32.gmra.mxu3 %v132_v43  ;;  %v500_v45 = vpop.f32.mrf.mxu1  ;;  %661 = vst [vmem:[#allocation10 + $0x1f0] sm:$0xff] %v291_v44  ;;  %v145_v44 = vld [vmem:[#allocation2 + $0x1e0] sm:$0xff] }
 0x1af   :  { %662 = vst [vmem:[#allocation10 + $0x1f8] sm:$0xff] %v500_v45 }
 0x1b0   :  { %v853_v46 = vpop.f32.mrf.mxu2  ;;  %338 = vmatmul.f32.gmra.mxu0 %v132_v43 }
 0x1b1   :  { %v1142_v47 = vpop.f32.mrf.mxu3  ;;  %983 = vst [vmem:[#allocation11 + $0xf8] sm:$0xff] %v853_v46  ;;  %547 = vmatmul.f32.gmra.mxu1 %v132_v43 }
 0x1b2   :  { %1272 = vst [vmem:[#allocation13 + $0xf8] sm:$0xff] %v1142_v47 }
 0x1b5   :  { %903 = vmatmul.f32.gmra.mxu2 %v133_v48  ;;  %v294_v49 = vpop.f32.mrf.mxu0 }
 0x1b6   :  { %1192 = vmatmul.f32.gmra.mxu3 %v133_v48  ;;  %v503_v50 = vpop.f32.mrf.mxu1  ;;  %663 = vst [vmem:[#allocation10 + $0x200] sm:$0xff] %v294_v49  ;;  %v146_v49 = vld [vmem:[#allocation2 + $0x1e8] sm:$0xff] }
 0x1b7   :  { %664 = vst [vmem:[#allocation10 + $0x208] sm:$0xff] %v503_v50 }
 0x1b8   :  { %v856_v51 = vpop.f32.mrf.mxu2  ;;  %341 = vmatmul.f32.gmra.mxu0 %v133_v48 }
 0x1b9   :  { %v1145_v52 = vpop.f32.mrf.mxu3  ;;  %984 = vst [vmem:[#allocation11 + $0x100] sm:$0xff] %v856_v51  ;;  %550 = vmatmul.f32.gmra.mxu1 %v133_v48 }
 0x1ba   :  { %1273 = vst [vmem:[#allocation13 + $0x100] sm:$0xff] %v1145_v52 }
 0x1bd   :  { %906 = vmatmul.f32.gmra.mxu2 %v134_v53  ;;  %v297_v54 = vpop.f32.mrf.mxu0 }
 0x1be   :  { %1195 = vmatmul.f32.gmra.mxu3 %v134_v53  ;;  %v506_v55 = vpop.f32.mrf.mxu1  ;;  %665 = vst [vmem:[#allocation10 + $0x210] sm:$0xff] %v297_v54  ;;  %v147_v54 = vld [vmem:[#allocation2 + $0x1f0] sm:$0xff] }
 0x1bf   :  { %666 = vst [vmem:[#allocation10 + $0x218] sm:$0xff] %v506_v55 }
 0x1c0   :  { %v859_v56 = vpop.f32.mrf.mxu2  ;;  %344 = vmatmul.f32.gmra.mxu0 %v134_v53 }
 0x1c1   :  { %v1148_v57 = vpop.f32.mrf.mxu3  ;;  %985 = vst [vmem:[#allocation11 + $0x108] sm:$0xff] %v859_v56  ;;  %553 = vmatmul.f32.gmra.mxu1 %v134_v53 }
 0x1c2   :  { %1274 = vst [vmem:[#allocation13 + $0x108] sm:$0xff] %v1148_v57 }
 0x1c5   :  { %909 = vmatmul.f32.gmra.mxu2 %v135_v58  ;;  %v300_v59 = vpop.f32.mrf.mxu0 }
 0x1c6   :  { %1198 = vmatmul.f32.gmra.mxu3 %v135_v58  ;;  %v509_v60 = vpop.f32.mrf.mxu1  ;;  %667 = vst [vmem:[#allocation10 + $0x220] sm:$0xff] %v300_v59  ;;  %v148_v59 = vld [vmem:[#allocation2 + $0x1f8] sm:$0xff] }
 0x1c7   :  { %668 = vst [vmem:[#allocation10 + $0x228] sm:$0xff] %v509_v60 }
 0x1c8   :  { %v862_v61 = vpop.f32.mrf.mxu2  ;;  %347 = vmatmul.f32.gmra.mxu0 %v135_v58 }
 0x1c9   :  { %v1151_v62 = vpop.f32.mrf.mxu3  ;;  %986 = vst [vmem:[#allocation11 + $0x110] sm:$0xff] %v862_v61  ;;  %556 = vmatmul.f32.gmra.mxu1 %v135_v58 }
 0x1ca   :  { %1275 = vst [vmem:[#allocation13 + $0x110] sm:$0xff] %v1151_v62 }
 0x1cd   :  { %912 = vmatmul.f32.gmra.mxu2 %v136_v63  ;;  %v303_v0 = vpop.f32.mrf.mxu0 }
 0x1ce   :  { %1201 = vmatmul.f32.gmra.mxu3 %v136_v63  ;;  %v512_v1 = vpop.f32.mrf.mxu1  ;;  %669 = vst [vmem:[#allocation10 + $0x230] sm:$0xff] %v303_v0 }
 0x1cf   :  { %670 = vst [vmem:[#allocation10 + $0x238] sm:$0xff] %v512_v1 }
 0x1d0   :  { %v865_v2 = vpop.f32.mrf.mxu2  ;;  %350 = vmatmul.f32.gmra.mxu0 %v136_v63 }
 0x1d1   :  { %v1154_v3 = vpop.f32.mrf.mxu3  ;;  %987 = vst [vmem:[#allocation11 + $0x118] sm:$0xff] %v865_v2  ;;  %559 = vmatmul.f32.gmra.mxu1 %v136_v63 }
 0x1d2   :  { %1276 = vst [vmem:[#allocation13 + $0x118] sm:$0xff] %v1154_v3 }
 0x1d5   :  { %915 = vmatmul.f32.gmra.mxu2 %v137_v4  ;;  %v306_v5 = vpop.f32.mrf.mxu0 }
 0x1d6   :  { %1204 = vmatmul.f32.gmra.mxu3 %v137_v4  ;;  %v515_v6 = vpop.f32.mrf.mxu1  ;;  %671 = vst [vmem:[#allocation10 + $0x240] sm:$0xff] %v306_v5 }
 0x1d7   :  { %672 = vst [vmem:[#allocation10 + $0x248] sm:$0xff] %v515_v6 }
 0x1d8   :  { %v868_v7 = vpop.f32.mrf.mxu2  ;;  %353 = vmatmul.f32.gmra.mxu0 %v137_v4 }
 0x1d9   :  { %v1157_v8 = vpop.f32.mrf.mxu3  ;;  %988 = vst [vmem:[#allocation11 + $0x120] sm:$0xff] %v868_v7  ;;  %562 = vmatmul.f32.gmra.mxu1 %v137_v4 }
 0x1da   :  { %1277 = vst [vmem:[#allocation13 + $0x120] sm:$0xff] %v1157_v8 }
 0x1dd   :  { %918 = vmatmul.f32.gmra.mxu2 %v138_v9  ;;  %v309_v10 = vpop.f32.mrf.mxu0 }
 0x1de   :  { %1207 = vmatmul.f32.gmra.mxu3 %v138_v9  ;;  %v518_v11 = vpop.f32.mrf.mxu1  ;;  %673 = vst [vmem:[#allocation10 + $0x250] sm:$0xff] %v309_v10 }
 0x1df   :  { %674 = vst [vmem:[#allocation10 + $0x258] sm:$0xff] %v518_v11 }
 0x1e0   :  { %v871_v12 = vpop.f32.mrf.mxu2  ;;  %356 = vmatmul.f32.gmra.mxu0 %v138_v9 }
 0x1e1   :  { %v1160_v13 = vpop.f32.mrf.mxu3  ;;  %989 = vst [vmem:[#allocation11 + $0x128] sm:$0xff] %v871_v12  ;;  %565 = vmatmul.f32.gmra.mxu1 %v138_v9 }
 0x1e2   :  { %1278 = vst [vmem:[#allocation13 + $0x128] sm:$0xff] %v1160_v13 }
 0x1e5   :  { %921 = vmatmul.f32.gmra.mxu2 %v139_v14  ;;  %v312_v15 = vpop.f32.mrf.mxu0 }
 0x1e6   :  { %1210 = vmatmul.f32.gmra.mxu3 %v139_v14  ;;  %v521_v16 = vpop.f32.mrf.mxu1  ;;  %675 = vst [vmem:[#allocation10 + $0x260] sm:$0xff] %v312_v15 }
 0x1e7   :  { %676 = vst [vmem:[#allocation10 + $0x268] sm:$0xff] %v521_v16 }
 0x1e8   :  { %v874_v17 = vpop.f32.mrf.mxu2  ;;  %359 = vmatmul.f32.gmra.mxu0 %v139_v14 }
 0x1e9   :  { %v1163_v18 = vpop.f32.mrf.mxu3  ;;  %990 = vst [vmem:[#allocation11 + $0x130] sm:$0xff] %v874_v17  ;;  %568 = vmatmul.f32.gmra.mxu1 %v139_v14 }
 0x1ea   :  { %1279 = vst [vmem:[#allocation13 + $0x130] sm:$0xff] %v1163_v18 }
 0x1ed   :  { %924 = vmatmul.f32.gmra.mxu2 %v140_v19  ;;  %v315_v20 = vpop.f32.mrf.mxu0 }
 0x1ee   :  { %1213 = vmatmul.f32.gmra.mxu3 %v140_v19  ;;  %v524_v21 = vpop.f32.mrf.mxu1  ;;  %677 = vst [vmem:[#allocation10 + $0x270] sm:$0xff] %v315_v20 }
 0x1ef   :  { %678 = vst [vmem:[#allocation10 + $0x278] sm:$0xff] %v524_v21 }
 0x1f0   :  { %v877_v22 = vpop.f32.mrf.mxu2  ;;  %362 = vmatmul.f32.gmra.mxu0 %v140_v19 }
 0x1f1   :  { %v1166_v23 = vpop.f32.mrf.mxu3  ;;  %991 = vst [vmem:[#allocation11 + $0x138] sm:$0xff] %v877_v22  ;;  %571 = vmatmul.f32.gmra.mxu1 %v140_v19 }
 0x1f2   :  { %1280 = vst [vmem:[#allocation13 + $0x138] sm:$0xff] %v1166_v23 }
 0x1f5   :  { %927 = vmatmul.f32.gmra.mxu2 %v141_v24  ;;  %v318_v25 = vpop.f32.mrf.mxu0 }
 0x1f6   :  { %1216 = vmatmul.f32.gmra.mxu3 %v141_v24  ;;  %v527_v26 = vpop.f32.mrf.mxu1  ;;  %679 = vst [vmem:[#allocation10 + $0x280] sm:$0xff] %v318_v25 }
 0x1f7   :  { %680 = vst [vmem:[#allocation10 + $0x288] sm:$0xff] %v527_v26 }
 0x1f8   :  { %v880_v27 = vpop.f32.mrf.mxu2  ;;  %365 = vmatmul.f32.gmra.mxu0 %v141_v24 }
 0x1f9   :  { %v1169_v28 = vpop.f32.mrf.mxu3  ;;  %992 = vst [vmem:[#allocation11 + $0x140] sm:$0xff] %v880_v27  ;;  %574 = vmatmul.f32.gmra.mxu1 %v141_v24 }
 0x1fa   :  { %1281 = vst [vmem:[#allocation13 + $0x140] sm:$0xff] %v1169_v28 }
 0x1fd   :  { %930 = vmatmul.f32.gmra.mxu2 %v142_v29  ;;  %v321_v30 = vpop.f32.mrf.mxu0 }
 0x1fe   :  { %1219 = vmatmul.f32.gmra.mxu3 %v142_v29  ;;  %v530_v31 = vpop.f32.mrf.mxu1  ;;  %681 = vst [vmem:[#allocation10 + $0x290] sm:$0xff] %v321_v30 }
 0x1ff   :  { %682 = vst [vmem:[#allocation10 + $0x298] sm:$0xff] %v530_v31 }
 0x200   :  { %v883_v32 = vpop.f32.mrf.mxu2  ;;  %368 = vmatmul.f32.gmra.mxu0 %v142_v29 }
 0x201   :  { %v1172_v33 = vpop.f32.mrf.mxu3  ;;  %993 = vst [vmem:[#allocation11 + $0x148] sm:$0xff] %v883_v32  ;;  %577 = vmatmul.f32.gmra.mxu1 %v142_v29 }
 0x202   :  { %1282 = vst [vmem:[#allocation13 + $0x148] sm:$0xff] %v1172_v33 }
 0x205   :  { %933 = vmatmul.f32.gmra.mxu2 %v143_v34  ;;  %v324_v35 = vpop.f32.mrf.mxu0 }
 0x206   :  { %1222 = vmatmul.f32.gmra.mxu3 %v143_v34  ;;  %v533_v36 = vpop.f32.mrf.mxu1  ;;  %683 = vst [vmem:[#allocation10 + $0x2a0] sm:$0xff] %v324_v35 }
 0x207   :  { %684 = vst [vmem:[#allocation10 + $0x2a8] sm:$0xff] %v533_v36 }
 0x208   :  { %v886_v37 = vpop.f32.mrf.mxu2  ;;  %371 = vmatmul.f32.gmra.mxu0 %v143_v34 }
 0x209   :  { %v1175_v38 = vpop.f32.mrf.mxu3  ;;  %994 = vst [vmem:[#allocation11 + $0x150] sm:$0xff] %v886_v37  ;;  %580 = vmatmul.f32.gmra.mxu1 %v143_v34 }
 0x20a   :  { %1283 = vst [vmem:[#allocation13 + $0x150] sm:$0xff] %v1175_v38 }
 0x20d   :  { %936 = vmatmul.f32.gmra.mxu2 %v144_v39  ;;  %v327_v40 = vpop.f32.mrf.mxu0 }
 0x20e   :  { %1225 = vmatmul.f32.gmra.mxu3 %v144_v39  ;;  %v536_v41 = vpop.f32.mrf.mxu1  ;;  %685 = vst [vmem:[#allocation10 + $0x2b0] sm:$0xff] %v327_v40 }
 0x20f   :  { %686 = vst [vmem:[#allocation10 + $0x2b8] sm:$0xff] %v536_v41 }
 0x210   :  { %v889_v42 = vpop.f32.mrf.mxu2  ;;  %374 = vmatmul.f32.gmra.mxu0 %v144_v39 }
 0x211   :  { %v1178_v43 = vpop.f32.mrf.mxu3  ;;  %995 = vst [vmem:[#allocation11 + $0x158] sm:$0xff] %v889_v42  ;;  %583 = vmatmul.f32.gmra.mxu1 %v144_v39 }
 0x212   :  { %1284 = vst [vmem:[#allocation13 + $0x158] sm:$0xff] %v1178_v43 }
 0x215   :  { %939 = vmatmul.f32.gmra.mxu2 %v145_v44  ;;  %v330_v45 = vpop.f32.mrf.mxu0 }
 0x216   :  { %1228 = vmatmul.f32.gmra.mxu3 %v145_v44  ;;  %v539_v46 = vpop.f32.mrf.mxu1  ;;  %687 = vst [vmem:[#allocation10 + $0x2c0] sm:$0xff] %v330_v45 }
 0x217   :  { %688 = vst [vmem:[#allocation10 + $0x2c8] sm:$0xff] %v539_v46 }
 0x218   :  { %v892_v47 = vpop.f32.mrf.mxu2  ;;  %377 = vmatmul.f32.gmra.mxu0 %v145_v44 }
 0x219   :  { %v1181_v48 = vpop.f32.mrf.mxu3  ;;  %996 = vst [vmem:[#allocation11 + $0x160] sm:$0xff] %v892_v47  ;;  %586 = vmatmul.f32.gmra.mxu1 %v145_v44 }
 0x21a   :  { %1285 = vst [vmem:[#allocation13 + $0x160] sm:$0xff] %v1181_v48 }
 0x21d   :  { %942 = vmatmul.f32.gmra.mxu2 %v146_v49  ;;  %v333_v50 = vpop.f32.mrf.mxu0 }
 0x21e   :  { %1231 = vmatmul.f32.gmra.mxu3 %v146_v49  ;;  %v542_v51 = vpop.f32.mrf.mxu1  ;;  %689 = vst [vmem:[#allocation10 + $0x2d0] sm:$0xff] %v333_v50 }
 0x21f   :  { %690 = vst [vmem:[#allocation10 + $0x2d8] sm:$0xff] %v542_v51 }
 0x220   :  { %v895_v52 = vpop.f32.mrf.mxu2  ;;  %380 = vmatmul.f32.gmra.mxu0 %v146_v49 }
 0x221   :  { %v1184_v53 = vpop.f32.mrf.mxu3  ;;  %997 = vst [vmem:[#allocation11 + $0x168] sm:$0xff] %v895_v52  ;;  %589 = vmatmul.f32.gmra.mxu1 %v146_v49 }
 0x222   :  { %1286 = vst [vmem:[#allocation13 + $0x168] sm:$0xff] %v1184_v53 }
 0x225   :  { %945 = vmatmul.f32.gmra.mxu2 %v147_v54  ;;  %v336_v55 = vpop.f32.mrf.mxu0 }
 0x226   :  { %1234 = vmatmul.f32.gmra.mxu3 %v147_v54  ;;  %v545_v56 = vpop.f32.mrf.mxu1  ;;  %691 = vst [vmem:[#allocation10 + $0x2e0] sm:$0xff] %v336_v55 }
 0x227   :  { %692 = vst [vmem:[#allocation10 + $0x2e8] sm:$0xff] %v545_v56 }
 0x228   :  { %v898_v57 = vpop.f32.mrf.mxu2  ;;  %383 = vmatmul.f32.gmra.mxu0 %v147_v54 }
 0x229   :  { %v1187_v58 = vpop.f32.mrf.mxu3  ;;  %998 = vst [vmem:[#allocation11 + $0x170] sm:$0xff] %v898_v57  ;;  %592 = vmatmul.f32.gmra.mxu1 %v147_v54 }
 0x22a   :  { %1287 = vst [vmem:[#allocation13 + $0x170] sm:$0xff] %v1187_v58 }
 0x22d   :  { %948 = vmatmul.f32.gmra.mxu2 %v148_v59  ;;  %v339_v60 = vpop.f32.mrf.mxu0 }
 0x22e   :  { %1237 = vmatmul.f32.gmra.mxu3 %v148_v59  ;;  %v548_v61 = vpop.f32.mrf.mxu1  ;;  %693 = vst [vmem:[#allocation10 + $0x2f0] sm:$0xff] %v339_v60 }
 0x22f   :  { %694 = vst [vmem:[#allocation10 + $0x2f8] sm:$0xff] %v548_v61 }
 0x230   :  { %v901_v62 = vpop.f32.mrf.mxu2  ;;  %386 = vmatmul.f32.gmra.mxu0 %v148_v59 }
 0x231   :  { %v1190_v63 = vpop.f32.mrf.mxu3  ;;  %999 = vst [vmem:[#allocation11 + $0x178] sm:$0xff] %v901_v62  ;;  %595 = vmatmul.f32.gmra.mxu1 %v148_v59 }
 0x232   :  { %1288 = vst [vmem:[#allocation13 + $0x178] sm:$0xff] %v1190_v63 }
 0x235   :  { %v342_v0 = vpop.f32.mrf.mxu0 }
 0x236   :  { %v551_v1 = vpop.f32.mrf.mxu1  ;;  %695 = vst [vmem:[#allocation10 + $0x300] sm:$0xff] %v342_v0 }
 0x237   :  { %696 = vst [vmem:[#allocation10 + $0x308] sm:$0xff] %v551_v1 }
 0x238   :  { %v904_v2 = vpop.f32.mrf.mxu2 }
 0x239   :  { %v1193_v3 = vpop.f32.mrf.mxu3  ;;  %1000 = vst [vmem:[#allocation11 + $0x180] sm:$0xff] %v904_v2 }
 0x23a   :  { %1289 = vst [vmem:[#allocation13 + $0x180] sm:$0xff] %v1193_v3 }
 0x23d   :  { %v345_v4 = vpop.f32.mrf.mxu0 }
 0x23e   :  { %v554_v5 = vpop.f32.mrf.mxu1  ;;  %697 = vst [vmem:[#allocation10 + $0x310] sm:$0xff] %v345_v4 }
 0x23f   :  { %698 = vst [vmem:[#allocation10 + $0x318] sm:$0xff] %v554_v5 }
 0x240   :  { %v907_v6 = vpop.f32.mrf.mxu2 }
 0x241   :  { %v1196_v7 = vpop.f32.mrf.mxu3  ;;  %1001 = vst [vmem:[#allocation11 + $0x188] sm:$0xff] %v907_v6 }
 0x242   :  { %1290 = vst [vmem:[#allocation13 + $0x188] sm:$0xff] %v1196_v7 }
 0x245   :  { %v348_v8 = vpop.f32.mrf.mxu0 }
 0x246   :  { %v557_v9 = vpop.f32.mrf.mxu1  ;;  %699 = vst [vmem:[#allocation10 + $0x320] sm:$0xff] %v348_v8 }
 0x247   :  { %700 = vst [vmem:[#allocation10 + $0x328] sm:$0xff] %v557_v9 }
 0x248   :  { %v910_v10 = vpop.f32.mrf.mxu2 }
 0x249   :  { %v1199_v11 = vpop.f32.mrf.mxu3  ;;  %1002 = vst [vmem:[#allocation11 + $0x190] sm:$0xff] %v910_v10 }
 0x24a   :  { %1291 = vst [vmem:[#allocation13 + $0x190] sm:$0xff] %v1199_v11 }
 0x24d   :  { %v351_v12 = vpop.f32.mrf.mxu0 }
 0x24e   :  { %v560_v13 = vpop.f32.mrf.mxu1  ;;  %701 = vst [vmem:[#allocation10 + $0x330] sm:$0xff] %v351_v12 }
 0x24f   :  { %702 = vst [vmem:[#allocation10 + $0x338] sm:$0xff] %v560_v13 }
 0x250   :  { %v913_v14 = vpop.f32.mrf.mxu2 }
 0x251   :  { %v1202_v15 = vpop.f32.mrf.mxu3  ;;  %1003 = vst [vmem:[#allocation11 + $0x198] sm:$0xff] %v913_v14 }
 0x252   :  { %1292 = vst [vmem:[#allocation13 + $0x198] sm:$0xff] %v1202_v15 }
 0x255   :  { %v354_v16 = vpop.f32.mrf.mxu0 }
 0x256   :  { %v563_v17 = vpop.f32.mrf.mxu1  ;;  %703 = vst [vmem:[#allocation10 + $0x340] sm:$0xff] %v354_v16 }
 0x257   :  { %704 = vst [vmem:[#allocation10 + $0x348] sm:$0xff] %v563_v17 }
 0x258   :  { %v916_v18 = vpop.f32.mrf.mxu2 }
 0x259   :  { %v1205_v19 = vpop.f32.mrf.mxu3  ;;  %1004 = vst [vmem:[#allocation11 + $0x1a0] sm:$0xff] %v916_v18 }
 0x25a   :  { %1293 = vst [vmem:[#allocation13 + $0x1a0] sm:$0xff] %v1205_v19 }
 0x25d   :  { %v357_v20 = vpop.f32.mrf.mxu0 }
 0x25e   :  { %v566_v21 = vpop.f32.mrf.mxu1  ;;  %705 = vst [vmem:[#allocation10 + $0x350] sm:$0xff] %v357_v20 }
 0x25f   :  { %706 = vst [vmem:[#allocation10 + $0x358] sm:$0xff] %v566_v21 }
 0x260   :  { %v919_v22 = vpop.f32.mrf.mxu2 }
 0x261   :  { %v1208_v23 = vpop.f32.mrf.mxu3  ;;  %1005 = vst [vmem:[#allocation11 + $0x1a8] sm:$0xff] %v919_v22 }
 0x262   :  { %1294 = vst [vmem:[#allocation13 + $0x1a8] sm:$0xff] %v1208_v23 }
 0x265   :  { %v360_v24 = vpop.f32.mrf.mxu0 }
 0x266   :  { %v569_v25 = vpop.f32.mrf.mxu1  ;;  %707 = vst [vmem:[#allocation10 + $0x360] sm:$0xff] %v360_v24 }
 0x267   :  { %708 = vst [vmem:[#allocation10 + $0x368] sm:$0xff] %v569_v25 }
 0x268   :  { %v922_v26 = vpop.f32.mrf.mxu2 }
 0x269   :  { %v1211_v27 = vpop.f32.mrf.mxu3  ;;  %1006 = vst [vmem:[#allocation11 + $0x1b0] sm:$0xff] %v922_v26 }
 0x26a   :  { %1295 = vst [vmem:[#allocation13 + $0x1b0] sm:$0xff] %v1211_v27 }
 0x26d   :  { %v363_v28 = vpop.f32.mrf.mxu0 }
 0x26e   :  { %v572_v29 = vpop.f32.mrf.mxu1  ;;  %709 = vst [vmem:[#allocation10 + $0x370] sm:$0xff] %v363_v28 }
 0x26f   :  { %710 = vst [vmem:[#allocation10 + $0x378] sm:$0xff] %v572_v29 }
 0x270   :  { %v925_v30 = vpop.f32.mrf.mxu2 }
 0x271   :  { %v1214_v31 = vpop.f32.mrf.mxu3  ;;  %1007 = vst [vmem:[#allocation11 + $0x1b8] sm:$0xff] %v925_v30 }
 0x272   :  { %1296 = vst [vmem:[#allocation13 + $0x1b8] sm:$0xff] %v1214_v31 }
 0x275   :  { %v366_v32 = vpop.f32.mrf.mxu0 }
 0x276   :  { %v575_v33 = vpop.f32.mrf.mxu1  ;;  %711 = vst [vmem:[#allocation10 + $0x380] sm:$0xff] %v366_v32 }
 0x277   :  { %712 = vst [vmem:[#allocation10 + $0x388] sm:$0xff] %v575_v33 }
 0x278   :  { %v928_v34 = vpop.f32.mrf.mxu2 }
 0x279   :  { %v1217_v35 = vpop.f32.mrf.mxu3  ;;  %1008 = vst [vmem:[#allocation11 + $0x1c0] sm:$0xff] %v928_v34 }
 0x27a   :  { %1297 = vst [vmem:[#allocation13 + $0x1c0] sm:$0xff] %v1217_v35 }
 0x27d   :  { %v369_v36 = vpop.f32.mrf.mxu0 }
 0x27e   :  { %v578_v37 = vpop.f32.mrf.mxu1  ;;  %713 = vst [vmem:[#allocation10 + $0x390] sm:$0xff] %v369_v36 }
 0x27f   :  { %714 = vst [vmem:[#allocation10 + $0x398] sm:$0xff] %v578_v37 }
 0x280   :  { %v931_v38 = vpop.f32.mrf.mxu2 }
 0x281   :  { %v1220_v39 = vpop.f32.mrf.mxu3  ;;  %1009 = vst [vmem:[#allocation11 + $0x1c8] sm:$0xff] %v931_v38 }
 0x282   :  { %1298 = vst [vmem:[#allocation13 + $0x1c8] sm:$0xff] %v1220_v39 }
 0x285   :  { %v372_v40 = vpop.f32.mrf.mxu0 }
 0x286   :  { %v581_v41 = vpop.f32.mrf.mxu1  ;;  %715 = vst [vmem:[#allocation10 + $0x3a0] sm:$0xff] %v372_v40 }
 0x287   :  { %716 = vst [vmem:[#allocation10 + $0x3a8] sm:$0xff] %v581_v41 }
 0x288   :  { %v934_v42 = vpop.f32.mrf.mxu2 }
 0x289   :  { %v1223_v43 = vpop.f32.mrf.mxu3  ;;  %1010 = vst [vmem:[#allocation11 + $0x1d0] sm:$0xff] %v934_v42 }
 0x28a   :  { %1299 = vst [vmem:[#allocation13 + $0x1d0] sm:$0xff] %v1223_v43 }
 0x28d   :  { %v375_v44 = vpop.f32.mrf.mxu0 }
 0x28e   :  { %v584_v45 = vpop.f32.mrf.mxu1  ;;  %717 = vst [vmem:[#allocation10 + $0x3b0] sm:$0xff] %v375_v44 }
 0x28f   :  { %718 = vst [vmem:[#allocation10 + $0x3b8] sm:$0xff] %v584_v45 }
 0x290   :  { %v937_v46 = vpop.f32.mrf.mxu2 }
 0x291   :  { %v1226_v47 = vpop.f32.mrf.mxu3  ;;  %1011 = vst [vmem:[#allocation11 + $0x1d8] sm:$0xff] %v937_v46 }
 0x292   :  { %1300 = vst [vmem:[#allocation13 + $0x1d8] sm:$0xff] %v1226_v47 }
 0x295   :  { %v378_v48 = vpop.f32.mrf.mxu0 }
 0x296   :  { %v587_v49 = vpop.f32.mrf.mxu1  ;;  %719 = vst [vmem:[#allocation10 + $0x3c0] sm:$0xff] %v378_v48 }
 0x297   :  { %720 = vst [vmem:[#allocation10 + $0x3c8] sm:$0xff] %v587_v49 }
 0x298   :  { %v940_v50 = vpop.f32.mrf.mxu2 }
 0x299   :  { %v1229_v51 = vpop.f32.mrf.mxu3  ;;  %1012 = vst [vmem:[#allocation11 + $0x1e0] sm:$0xff] %v940_v50 }
 0x29a   :  { %1301 = vst [vmem:[#allocation13 + $0x1e0] sm:$0xff] %v1229_v51 }
 0x29d   :  { %v381_v52 = vpop.f32.mrf.mxu0 }
 0x29e   :  { %v590_v53 = vpop.f32.mrf.mxu1  ;;  %721 = vst [vmem:[#allocation10 + $0x3d0] sm:$0xff] %v381_v52 }
 0x29f   :  { %722 = vst [vmem:[#allocation10 + $0x3d8] sm:$0xff] %v590_v53 }
 0x2a0   :  { %v943_v54 = vpop.f32.mrf.mxu2 }
 0x2a1   :  { %v1232_v55 = vpop.f32.mrf.mxu3  ;;  %1013 = vst [vmem:[#allocation11 + $0x1e8] sm:$0xff] %v943_v54 }
 0x2a2   :  { %1302 = vst [vmem:[#allocation13 + $0x1e8] sm:$0xff] %v1232_v55 }
 0x2a5   :  { %v384_v56 = vpop.f32.mrf.mxu0 }
 0x2a6   :  { %v593_v57 = vpop.f32.mrf.mxu1  ;;  %723 = vst [vmem:[#allocation10 + $0x3e0] sm:$0xff] %v384_v56 }
 0x2a7   :  { %724 = vst [vmem:[#allocation10 + $0x3e8] sm:$0xff] %v593_v57 }
 0x2a8   :  { %v946_v58 = vpop.f32.mrf.mxu2 }
 0x2a9   :  { %v1235_v59 = vpop.f32.mrf.mxu3  ;;  %1014 = vst [vmem:[#allocation11 + $0x1f0] sm:$0xff] %v946_v58 }
 0x2aa   :  { %1303 = vst [vmem:[#allocation13 + $0x1f0] sm:$0xff] %v1235_v59 }
 0x2ad   :  { %v387_v60 = vpop.f32.mrf.mxu0 }
 0x2ae   :  { %v596_v61 = vpop.f32.mrf.mxu1  ;;  %725 = vst [vmem:[#allocation10 + $0x3f0] sm:$0xff] %v387_v60 }
 0x2af   :  { %726 = vst [vmem:[#allocation10 + $0x3f8] sm:$0xff] %v596_v61 }
 0x2b0   :  { %v949_v62 = vpop.f32.mrf.mxu2  ;;  %1317 = dma.vmem_to_hbm [thread:$0]  %s1310_s3, 16384, %s1312_s21, [#allocation4], %s1551_s29, %s1551_s29, %s1552_s30  }
 0x2b1   :  { %v1238_v63 = vpop.f32.mrf.mxu3  ;;  %1015 = vst [vmem:[#allocation11 + $0x1f8] sm:$0xff] %v949_v62 }
 0x2b2   :  { %1304 = vst [vmem:[#allocation13 + $0x1f8] sm:$0xff] %v1238_v63  ;;  %1330 = dma.vmem_to_hbm [thread:$0]  %s1323_s23, 8192, %s1325_s26, [#allocation12], %s1554_s1, %s1554_s1, %s1555_s9  }
 0x2b3   :  { %1343 = dma.vmem_to_hbm [thread:$0]  %s1336_s28, 8192, %s1338_s10, [#allocation12], %s1554_s1, %s1554_s1, %s1555_s9  }
 0x2b4   :  { %1546 = dma.done.wait [#allocation4], 16384  }
 0x2b5   :  { %1547 = vsyncadd [#allocation4], 4294950912 }
 0x2b6   :  { %1548 = dma.done.wait [#allocation12], 16384  }
 0x2b7   :  { %1549 = vsyncadd [#allocation12], 4294950912 }
 0x2b8   :  { %1356 = vsyncpa [#allocation3], 1 }
 0x2b9   :  { %1357 = vsyncpa [#allocation6], 1 }
 0x2ba   :  { %1358 = vsyncpa [#allocation9], 1 }
 0x2bb   :  { %1359 = vsyncpa [#allocation4], 1 }
 0x2bc   :  { %1360 = vsyncpa [#allocation12], 1 }

</bundles_post_ra>
